<compile_context>
chip_gen: v7x
topology: tpu7x:2x2x1
jax: 0.10.0
libtpu: 0.0.40
codegen_flags: <defaults>
</compile_context>

<pallas_src>
import functools

import jax
import jax.numpy as jnp
from jax.experimental import pallas as pl
from jax.experimental.pallas import tpu as pltpu


def qnn1_kernel(cout_ref, t_ref, w1c_ref, c1_ref, w2h_ref, c2_ref, wo_ref,
                out_ref):
    # cout_ref: (1,) SMEM = [c_out scalar] (output bias with In1 folded in)
    # t_ref:    (1, 1, TILE_N) row tile of t (batch on lanes)
    # w1c_ref:  (D, 1)  Lin_1 weight column acting on t
    # c1_ref:   (D, 1)  Lin_1 bias with the In1 contribution folded in
    # w2h_ref:  (D, D)  Lin_2 weight block acting on the hidden state
    # c2_ref:   (D, 1)  Lin_2 bias with the In1 contribution folded in
    # wo_ref:   (1, D)  output-layer weight row acting on the hidden state
    t_row = t_ref[0]                                        # (1, TILE_N)
    tile_n = t_row.shape[1]

    # Layer 1: single broadcast-multiply shared by the +t / -t branches,
    # then one sin over the lane-stacked pair of pre-activations.
    a = w1c_ref[...] * t_row                                # (D, TILE_N)
    c1 = c1_ref[...]                                        # (D, 1)
    pre1 = jnp.concatenate([a + c1, c1 - a], axis=1)        # (D, 2*TILE_N)
    h1 = jnp.sin(pre1)                                      # (D, 2*TILE_N)

    # Layer 2: single fused MXU matmul for both branches, then sin.
    l2 = jnp.dot(w2h_ref[...], h1,
                 preferred_element_type=jnp.float32) + c2_ref[...]
    h2 = jnp.sin(l2)                                        # (D, 2*TILE_N)

    # Symmetric combination (self.sym == True) and output layer.
    hsum = h2[:, :tile_n] + h2[:, tile_n:]                  # (D, TILE_N)
    out = jnp.dot(wo_ref[...], hsum,
                  preferred_element_type=jnp.float32) + cout_ref[0]   # (1, TILE_N)

    out_ref[0] = out                                        # lane-dense store


def _prepare(raw):
    """Fold the constant In1 = Ein(1) into biases; lay weights out for (D, n) compute."""
    D = raw['W1'].shape[0]
    in1 = raw['WE'][0, 0] + raw['bE'][0]                           # scalar In1
    w1c = raw['W1'][:, 0:1]                                        # (D, 1)
    c1 = raw['W1'][:, 1:2] * in1 + raw['b1'].reshape(D, 1)         # (D, 1)
    w2h = raw['W2'][:, :D]                                         # (D, D)
    c2 = raw['W2'][:, D:D + 1] * in1 + raw['b2'].reshape(D, 1)     # (D, 1)
    wo_row = raw['Wo'][:, :D]                                      # (1, D)
    c_out = raw['Wo'][0, D] * in1 + raw['bo'][0]                   # scalar
    cout = jnp.reshape(c_out, (1,)).astype(jnp.float32)            # (1,) -> SMEM
    return in1, cout, w1c, c1, w2h, c2, wo_row


@functools.partial(jax.jit, static_argnames=("tile_n",))
def qnn1_forward(t, raw, tile_n=8192):
    """t: (N, 1) float32.  Returns (out, In1), both (N, 1), matching qNN1.forward."""
    assert tile_n % 128 == 0
    N = t.shape[0]
    in1, cout, w1c, c1, w2h, c2, wo_row = _prepare(raw)
    D = w2h.shape[0]

    # Lane-dense row tile: multiple of 128; large default amortizes grid-step
    # overhead while per-tile VMEM stays a few MiB (safe on v5e/v6e/v7x).
    tile = min(tile_n, ((N + 127) // 128) * 128)
    n_pad = ((N + tile - 1) // tile) * tile
    num_tiles = n_pad // tile

    t_flat = jnp.pad(t.reshape(-1).astype(jnp.float32), (0, n_pad - N))
    t3 = t_flat.reshape(num_tiles, 1, tile)

    row_spec = pl.BlockSpec((1, 1, tile), lambda i: (i, 0, 0))

    def const_spec(shape):                 # weights: constant block -> stay resident
        return pl.BlockSpec(shape, lambda i: (0, 0))

    # Cost hint: kernel is transcendental (sin) dominated, not bytes-dominated.
    cost = pl.CostEstimate(
        flops=(2 * D * D * 2 * n_pad        # layer-2 matmul (both branches)
               + 2 * D * n_pad              # output row matmul
               + 6 * D * 2 * n_pad),        # layer-1 mul/add + bias adds
        transcendentals=2 * D * 2 * n_pad,  # sins of layer 1 + layer 2
        bytes_accessed=8 * n_pad,           # t read + out write (f32)
    )

    out3 = pl.pallas_call(
        qnn1_kernel,
        out_shape=jax.ShapeDtypeStruct((num_tiles, 1, tile), jnp.float32),
        grid=(num_tiles,),
        in_specs=[
            pl.BlockSpec(memory_space=pltpu.MemorySpace.SMEM),  # c_out scalar
            row_spec,                                           # t row tile
            const_spec((D, 1)),                                 # w1c
            const_spec((D, 1)),                                 # c1
            const_spec((D, D)),                                 # w2h
            const_spec((D, 1)),                                 # c2
            const_spec((1, D)),                                 # wo_row
        ],
        out_specs=row_spec,
        compiler_params=pltpu.CompilerParams(
            dimension_semantics=("parallel",),
            vmem_limit_bytes=32 * 1024 * 1024),
        cost_estimate=cost,
    )(cout, t3, w1c, c1, w2h, c2, wo_row)

    out = out3.reshape(n_pad, 1)[:N]
    # In1 is a row constant -> produced in the wrapper, not by the kernel.
    In1 = jnp.broadcast_to(in1, (N, 1)).astype(jnp.float32)
    return out, In1


def init_raw_params(key, D_hid):
    """PyTorch-Linear-style init: U(-1/sqrt(fan_in), 1/sqrt(fan_in)), PyTorch layout."""
    ks = jax.random.split(key, 8)

    def lin(kw, kb, fan_in, fan_out):
        k = 1.0 / float(fan_in) ** 0.5
        W = jax.random.uniform(kw, (fan_out, fan_in), jnp.float32, -k, k)
        b = jax.random.uniform(kb, (fan_out,), jnp.float32, -k, k)
        return W, b

    WE, bE = lin(ks[0], ks[1], 1, 1)
    W1, b1 = lin(ks[2], ks[3], 2, D_hid)
    W2, b2 = lin(ks[4], ks[5], D_hid + 1, D_hid)
    Wo, bo = lin(ks[6], ks[7], D_hid + 1, 1)
    return dict(WE=WE, bE=bE, W1=W1, b1=b1, W2=W2, b2=b2, Wo=Wo, bo=bo)


def qnn1_ref(t, raw):
    """Pure-JAX reference matching the PyTorch forward pass exactly (sym=True)."""
    In1 = jnp.ones_like(t) @ raw['WE'].T + raw['bE']
    x1 = jnp.concatenate([t, In1], axis=1)
    x1p = jnp.concatenate([-t, In1], axis=1)
    h1 = jnp.sin(x1 @ raw['W1'].T + raw['b1'])
    h1p = jnp.sin(x1p @ raw['W1'].T + raw['b1'])
    h2 = jnp.sin(jnp.concatenate([h1, In1], axis=1) @ raw['W2'].T + raw['b2'])
    h2p = jnp.sin(jnp.concatenate([h1p, In1], axis=1) @ raw['W2'].T + raw['b2'])
    out = jnp.concatenate([h2 + h2p, In1], axis=1) @ raw['Wo'].T + raw['bo']
    return out, In1


if __name__ == "__main__":
    D_hid = 32

    key = jax.random.PRNGKey(0)
    k_t, k_p, k_t2 = jax.random.split(key, 3)
    raw = init_raw_params(k_p, D_hid)

    # Small case (single tile, rounds up to one 128-lane tile).
    t = jax.random.uniform(k_t, (8, 1), jnp.float32, 0.0, 4.0)
    out, In1 = qnn1_forward(t, raw)
    jax.block_until_ready((out, In1))
    out_r, In1_r = qnn1_ref(t, raw)
    assert out.shape == (8, 1) and In1.shape == (8, 1)
    assert jnp.allclose(out, out_r, atol=2e-5, rtol=2e-5)
    assert jnp.allclose(In1, In1_r, atol=2e-5, rtol=2e-5)

    # Larger case exercising the parallel grid + row padding path.
    t2 = jax.random.uniform(k_t2, (300, 1), jnp.float32, 0.0, 4.0)
    out2, In12 = qnn1_forward(t2, raw, tile_n=128)
    jax.block_until_ready((out2, In12))
    out2_r, In12_r = qnn1_ref(t2, raw)
    assert out2.shape == (300, 1) and In12.shape == (300, 1)
    assert jnp.allclose(out2, out2_r, atol=2e-5, rtol=2e-5)
    assert jnp.allclose(In12, In12_r, atol=2e-5, rtol=2e-5)

    print("KERNEL_OK")
</pallas_src>

<mosaic_0001>
module attributes {stable_mosaic.version = 11 : i64} {
  func.func @qnn1_kernel(%arg0: i32, %arg1: memref<1xf32, #tpu.memory_space<smem>>, %arg2: memref<1x1x128xf32, #tpu.memory_space<vmem>>, %arg3: memref<32x1xf32, #tpu.memory_space<vmem>>, %arg4: memref<32x1xf32, #tpu.memory_space<vmem>>, %arg5: memref<32x32xf32, #tpu.memory_space<vmem>>, %arg6: memref<32x1xf32, #tpu.memory_space<vmem>>, %arg7: memref<1x32xf32, #tpu.memory_space<vmem>>, %arg8: memref<1x1x128xf32, #tpu.memory_space<vmem>>) attributes {dimension_semantics = [#tpu.dimension_semantics<parallel>], iteration_bounds = array<i64: 1>, scalar_prefetch = 0 : i64, scratch_operands = 0 : i64, tpu.core_type = #tpu.core_type<tc>, window_params = [{transform_indices = @transform_0, window_bounds = array<i64: 1>}, {transform_indices = @transform_1, window_bounds = array<i64: 1, 1, 128>}, {pipeline_mode = #tpu.pipeline_mode<synchronous>, transform_indices = @transform_2, window_bounds = array<i64: 32, 1>}, {pipeline_mode = #tpu.pipeline_mode<synchronous>, transform_indices = @transform_3, window_bounds = array<i64: 32, 1>}, {pipeline_mode = #tpu.pipeline_mode<synchronous>, transform_indices = @transform_4, window_bounds = array<i64: 32, 32>}, {pipeline_mode = #tpu.pipeline_mode<synchronous>, transform_indices = @transform_5, window_bounds = array<i64: 32, 1>}, {pipeline_mode = #tpu.pipeline_mode<synchronous>, transform_indices = @transform_6, window_bounds = array<i64: 1, 32>}, {transform_indices = @transform_7, window_bounds = array<i64: 1, 1, 128>}]} {
    %c0 = arith.constant 0 : index
    %c0_0 = arith.constant 0 : index
    %c0_1 = arith.constant 0 : index
    %0 = vector.load %arg2[%c0, %c0_0, %c0_1] : memref<1x1x128xf32, #tpu.memory_space<vmem>>, vector<1x1x128xf32>
    %1 = vector.shape_cast %0 : vector<1x1x128xf32> to vector<1x128xf32>
    %c0_2 = arith.constant 0 : index
    %c0_3 = arith.constant 0 : index
    %2 = vector.load %arg3[%c0_2, %c0_3] : memref<32x1xf32, #tpu.memory_space<vmem>>, vector<32x1xf32>
    %3 = vector.broadcast %2 : vector<32x1xf32> to vector<32x128xf32>
    %4 = vector.broadcast %1 : vector<1x128xf32> to vector<32x128xf32>
    %5 = arith.mulf %3, %4 : vector<32x128xf32>
    %c0_4 = arith.constant 0 : index
    %c0_5 = arith.constant 0 : index
    %6 = vector.load %arg4[%c0_4, %c0_5] : memref<32x1xf32, #tpu.memory_space<vmem>>, vector<32x1xf32>
    %7 = vector.broadcast %6 : vector<32x1xf32> to vector<32x128xf32>
    %8 = arith.addf %5, %7 : vector<32x128xf32>
    %9 = vector.broadcast %6 : vector<32x1xf32> to vector<32x128xf32>
    %10 = arith.subf %9, %5 : vector<32x128xf32>
    %11 = tpu.concatenate %8, %10 in 1 : vector<32x128xf32>, vector<32x128xf32> -> vector<32x256xf32>
    %12 = math.sin %11 : vector<32x256xf32>
    %c0_6 = arith.constant 0 : index
    %c0_7 = arith.constant 0 : index
    %13 = vector.load %arg5[%c0_6, %c0_7] : memref<32x32xf32, #tpu.memory_space<vmem>>, vector<32x32xf32>
    %cst = arith.constant dense<0.000000e+00> : vector<32x256xf32>
    %14 = tpu.matmul %13, %12, %cst {dimension_numbers = #tpu.dot_dimension_numbers<[1], [0], [0], [1], [0, 0, 1, 1], [], []>} : vector<32x32xf32>, vector<32x256xf32>, vector<32x256xf32> -> vector<32x256xf32>
    %c0_8 = arith.constant 0 : index
    %c0_9 = arith.constant 0 : index
    %15 = vector.load %arg6[%c0_8, %c0_9] : memref<32x1xf32, #tpu.memory_space<vmem>>, vector<32x1xf32>
    %16 = vector.broadcast %15 : vector<32x1xf32> to vector<32x256xf32>
    %17 = arith.addf %14, %16 : vector<32x256xf32>
    %18 = math.sin %17 : vector<32x256xf32>
    %19 = vector.extract_strided_slice %18 {offsets = [0, 0], sizes = [32, 128], strides = [1, 1]} : vector<32x256xf32> to vector<32x128xf32>
    %20 = vector.extract_strided_slice %18 {offsets = [0, 128], sizes = [32, 128], strides = [1, 1]} : vector<32x256xf32> to vector<32x128xf32>
    %21 = arith.addf %19, %20 : vector<32x128xf32>
    %c0_10 = arith.constant 0 : index
    %c0_11 = arith.constant 0 : index
    %22 = vector.load %arg7[%c0_10, %c0_11] : memref<1x32xf32, #tpu.memory_space<vmem>>, vector<1x32xf32>
    %cst_12 = arith.constant dense<0.000000e+00> : vector<1x128xf32>
    %23 = tpu.matmul %22, %21, %cst_12 {dimension_numbers = #tpu.dot_dimension_numbers<[1], [0], [0], [1], [0, 0, 1, 1], [], []>} : vector<1x32xf32>, vector<32x128xf32>, vector<1x128xf32> -> vector<1x128xf32>
    %c0_13 = arith.constant 0 : index
    %24 = memref.load %arg1[%c0_13] : memref<1xf32, #tpu.memory_space<smem>>
    %25 = vector.broadcast %24 : f32 to vector<1x128xf32>
    %26 = arith.addf %23, %25 : vector<1x128xf32>
    %c0_14 = arith.constant 0 : index
    %c0_15 = arith.constant 0 : index
    %c0_16 = arith.constant 0 : index
    %27 = vector.load %arg8[%c0_14, %c0_15, %c0_16] : memref<1x1x128xf32, #tpu.memory_space<vmem>>, vector<1x1x128xf32>
    %28 = vector.shape_cast %27 : vector<1x1x128xf32> to vector<1x128xf32>
    %29 = vector.shape_cast %26 : vector<1x128xf32> to vector<1x1x128xf32>
    tpu.vector_store %arg8[%c0_14, %c0_15, %c0_16], %29 {strides = array<i32>} : memref<1x1x128xf32, #tpu.memory_space<vmem>>, vector<1x1x128xf32>,
    return
  }
  func.func @transform_0(%arg0: i32) -> i32 {
    %c0_i32 = arith.constant 0 : i32
    %c0_i32_0 = arith.constant 0 : i32
    return %c0_i32 : i32
  }
  func.func @transform_1(%arg0: i32) -> (i32, i32, i32) {
    %c0_i32 = arith.constant 0 : i32
    %c0_i32_0 = arith.constant 0 : i32
    %c0_i32_1 = arith.constant 0 : i32
    return %arg0, %c0_i32, %c0_i32_0 : i32, i32, i32
  }
  func.func @transform_2(%arg0: i32) -> (i32, i32) {
    %c0_i32 = arith.constant 0 : i32
    %c0_i32_0 = arith.constant 0 : i32
    %c0_i32_1 = arith.constant 0 : i32
    return %c0_i32, %c0_i32_0 : i32, i32
  }
  func.func @transform_3(%arg0: i32) -> (i32, i32) {
    %c0_i32 = arith.constant 0 : i32
    %c0_i32_0 = arith.constant 0 : i32
    %c0_i32_1 = arith.constant 0 : i32
    return %c0_i32, %c0_i32_0 : i32, i32
  }
  func.func @transform_4(%arg0: i32) -> (i32, i32) {
    %c0_i32 = arith.constant 0 : i32
    %c0_i32_0 = arith.constant 0 : i32
    %c0_i32_1 = arith.constant 0 : i32
    return %c0_i32, %c0_i32_0 : i32, i32
  }
  func.func @transform_5(%arg0: i32) -> (i32, i32) {
    %c0_i32 = arith.constant 0 : i32
    %c0_i32_0 = arith.constant 0 : i32
    %c0_i32_1 = arith.constant 0 : i32
    return %c0_i32, %c0_i32_0 : i32, i32
  }
  func.func @transform_6(%arg0: i32) -> (i32, i32) {
    %c0_i32 = arith.constant 0 : i32
    %c0_i32_0 = arith.constant 0 : i32
    %c0_i32_1 = arith.constant 0 : i32
    return %c0_i32, %c0_i32_0 : i32, i32
  }
  func.func @transform_7(%arg0: i32) -> (i32, i32, i32) {
    %c0_i32 = arith.constant 0 : i32
    %c0_i32_0 = arith.constant 0 : i32
    %c0_i32_1 = arith.constant 0 : i32
    return %arg0, %c0_i32, %c0_i32_0 : i32, i32, i32
  }
}

</mosaic_0001>

<bundles_post_ra>
// kernel: qnn1_forward.1
= control target key start
LH: loop header
LB: loop body
LE: loop exit
PB: predicated region body
PF: predicated region fallthrough
CT: control target
= control target key end

     0   :  { %v2213_v0 = vmov 0   ;;  %v3868_v61 = vmov 683565275   ;;  %s3848_s3 = inlined_call_operand.vmem [shape: f32[32,1], index: 3, kind: input, shape index: {}]   ;;  %s3849_s2 = inlined_call_operand.vmem [shape: f32[32,1], index: 2, kind: input, shape index: {}]   ;;  %s3850_s5 = inlined_call_operand.vmem [shape: f32[32,1], index: 5, kind: input, shape index: {}]   ;;  %s3851_s1 = inlined_call_operand.vmem [shape: f32[1,1,128], index: 1, kind: input, shape index: {}]   ;;  %s3852_s4 = inlined_call_operand.vmem [shape: f32[32,32], index: 4, kind: input, shape index: {}]   ;;  %s3853_s6 = inlined_call_operand.vmem [shape: f32[1,32], index: 6, kind: input, shape index: {}]   ;;  %s3854_s0 = inlined_call_operand.<no memory space> [shape: f32[1], index: 0, kind: input, shape index: {}]   ;;  %s3855_s7 = inlined_call_operand.vmem [shape: f32[1,1,128], index: 7, kind: output, shape index: {}]  }
   0x1   :  { %2148 = vset.pattern.permute.xlu1 %v2213_v0  ;;  %2147 = vset.pattern.permute.xlu0 %v2213_v0  ;;  %v62_v1 = vld [vmem:[%s3848_s3] sm:$0xff]  ;;  %v63_v3 = vld [vmem:[%s3848_s3 + $0x8] sm:$0xff]  ;;  %v31_v5 = vld [vmem:[%s3849_s2 + $0x18] sm:$0xff] }
   0x2   :  { %v28_v2 = vld [vmem:[%s3849_s2] sm:$0xff]  ;;  %68 = vperm.xlu1 %2148, %v62_v1   ;;  %v29_v4 = vld [vmem:[%s3849_s2 + $0x8] sm:$0xff]  ;;  %v30_v6 = vld [vmem:[%s3849_s2 + $0x10] sm:$0xff]  ;;  %v3876_v1 = vmov 2475754826  }
   0x3   :  { %34 = vperm.xlu0 %2147, %v28_v2   ;;  %v65_v7 = vld [vmem:[%s3848_s3 + $0x18] sm:$0xff]  ;;  %v64_v8 = vld [vmem:[%s3848_s3 + $0x10] sm:$0xff]  ;;  %v931_v9 = vld [vmem:[%s3850_s5 + $0x8] sm:$0xff] }
   0x4   :  { %v930_v10 = vld [vmem:[%s3850_s5] sm:$0xff]  ;;  %v933_v11 = vld [vmem:[%s3850_s5 + $0x18] sm:$0xff]  ;;  %v932_v12 = vld [vmem:[%s3850_s5 + $0x10] sm:$0xff] }
   0x5   :  { %v1973_v17 = vld [vmem:[%s3851_s1] ss:$0 sm:$0xff] }
   0x6   :  { %73 = vperm.xlu1 %2148, %v63_v3   ;;  %v3882_v3 = vmov 2131351028  }
   0x7   :  { %39 = vperm.xlu0 %2147, %v29_v4  }
   0xa   :  { %49 = vperm.xlu1 %2148, %v31_v5   ;;  %v3886_v5 = vmov 2102212464  }
   0xb   :  { %44 = vperm.xlu0 %2147, %v30_v6  }
   0xe   :  { %83 = vperm.xlu1 %2148, %v65_v7   ;;  %v3864_v7 = vmov 920167782  }
   0xf   :  { %78 = vperm.xlu0 %2147, %v64_v8  }
  0x12   :  { %941 = vperm.xlu1 %2148, %v931_v9  }
  0x13   :  { %936 = vperm.xlu0 %2147, %v930_v10  }
  0x16   :  { %951 = vperm.xlu1 %2148, %v933_v11  }
  0x17   :  { %946 = vperm.xlu0 %2147, %v932_v12  }
  0x81   :  { %v69_v13 = vpop.permute.xlu1 %68 }
  0x82   :  { %v35_v15 = vpop.permute.xlu0 %34 }
  0x83   :  { %v58_v18 = vmul.f32 %v1973_v17, %v35_v15 }
  0x85   :  { %v74_v14 = vpop.permute.xlu1 %73  ;;  %v2302_v22 = vadd.f32 %v69_v13, %v58_v18  ;;  %v2306_v24 = vsub.f32 %v69_v13, %v58_v18 }
  0x86   :  { %v40_v20 = vpop.permute.xlu0 %39 }
  0x87   :  { %v97_v25 = vand.u32 2139095040, %v2302_v22  ;;  %v201_v30 = vand.u32 2139095040, %v2306_v24  ;;  %v59_v31 = vmul.f32 %v1973_v17, %v40_v20  ;;  %v3861_v39 = vand.u32 2147483647, %v2306_v24 }
  0x89   :  { %v50_v16 = vpop.permute.xlu1 %49  ;;  %v98_v33 = vshrl.u32 %v97_v25, 23  ;;  %v202_v37 = vshrl.u32 %v201_v30, 23  ;;  %v2320_v40 = vadd.f32 %v74_v14, %v59_v31  ;;  %v2324_v45 = vsub.f32 %v74_v14, %v59_v31 }
  0x8a   :  { %v61_v21 = vmul.f32 %v1973_v17, %v50_v16  ;;  %v45_v26 = vpop.permute.xlu0 %44  ;;  %v2333_v51 = vand.u32 8388607, %v3861_v39  ;;  %v3862_v14 = vmov 1326507024  }
  0x8b   :  { %3901 = vst [vmem:[#allocation4_spill] sm:$0xff] %v2320_v40  ;;  %v2322_v41 = vmul.f32 %v1973_v17, %v45_v26  ;;  %v1974_v44 = vadd.s32 4294967169, %v98_v33  ;;  %3902 = vst [vmem:[#allocation5_spill] sm:$0xff] %v2324_v45  ;;  %v1978_v52 = vadd.s32 4294967169, %v202_v37  ;;  %v305_v53 = vand.u32 2139095040, %v2320_v40 }
  0x8c   :  { %v409_v57 = vand.u32 2139095040, %v2324_v45 }
  0x8d   :  { %v84_v19 = vpop.permute.xlu1 %83  ;;  %v2336_v56 = vadd.s32 1, %v1974_v44 }
  0x8e   :  { %v2304_v23 = vadd.f32 %v84_v19, %v61_v21  ;;  %v2310_v28 = vsub.f32 %v84_v19, %v61_v21  ;;  %v2317_v38 = vpop.permute.xlu0 %78 }
  0x8f   :  { %v2329_v49 = vadd.f32 %v2317_v38, %v2322_v41  ;;  %vm105_vm12 = vcmp.gt.s32.totalorder %v2336_v56, 0 }
  0x90   :  { %v3857_v27 = vand.u32 2147483647, %v2304_v23  ;;  %3900 = vst [vmem:[#allocation3_spill] sm:$0xff] %v2310_v28  ;;  %v721_v29 = vand.u32 2139095040, %v2304_v23  ;;  %v825_v36 = vand.u32 2139095040, %v2310_v28 }
  0x91   :  { %v3856_v47 = vand.u32 2147483647, %v2310_v28  ;;  %3903 = vst [vmem:[#allocation6_spill] sm:$0xff] %v2329_v49  ;;  %v513_v0 = vand.u32 2139095040, %v2329_v49 }
  0x92   :  { %v722_v32 = vshrl.u32 %v721_v29, 23  ;;  %v725_v34 = vand.u32 8388607, %v3857_v27  ;;  %v826_v43 = vshrl.u32 %v825_v36, 23 }
  0x93   :  { %v2343_v59 = vand.u32 8388607, %v3856_v47 }
  0x94   :  { %v1998_v35 = vadd.s32 4294967169, %v722_v32  ;;  %v726_v46 = vor.u32 8388608, %v725_v34  ;;  %v2002_v48 = vadd.s32 4294967169, %v826_v43  ;;  %v514_v34 = vshrl.u32 %v513_v0, 23 }
  0x96   :  { %v728_v42 = vadd.s32 1, %v1998_v35  ;;  %v2339_v58 = vshll.u32 %v726_v46, 8  ;;  %v832_v63 = vadd.s32 1, %v2002_v48  ;;  %v1990_v0 = vadd.s32 4294967169, %v514_v34 }
  0x98   :  { %vm729_vm0 = vcmp.gt.s32.totalorder %v728_v42, 0  ;;  %vm833_vm3 = vcmp.gt.s32.totalorder %v832_v63, 0 }
  0x99   :  { %v730_v50 = vsel %vm729_vm0, %v728_v42, 0  ;;  %v834_v21 = vsel %vm833_vm3, %v832_v63, 0  ;;  %v2363_v42 = vadd.s32 1, %v1978_v52 }
  0x9a   :  { %v731_v54 = vshrl.u32 %v730_v50, 5  ;;  %v732_v55 = vand.u32 31, %v730_v50  ;;  %v836_v37 = vand.u32 31, %v834_v21  ;;  %v2375_v63 = vshrl.u32 %v834_v21, 5 }
  0x9b   :  { %v520_v21 = vadd.s32 1, %v1990_v0  ;;  %vm209_vm13 = vcmp.gt.s32.totalorder %v2363_v42, 0 }
  0x9c   :  { %v733_v60 = vsub.s32 32, %v732_v55  ;;  %v735_v62 = vshll.u32 %v3868_v61, %v732_v55  ;;  %v738_v2 = vshll.u32 %v3876_v1, %v732_v55  ;;  %v741_v4 = vshll.u32 %v3882_v3, %v732_v55 }
  0x9d   :  { %v744_v6 = vshll.u32 %v3886_v5, %v732_v55  ;;  %v747_v8 = vshll.u32 %v3864_v7, %v732_v55  ;;  %vm750_vm1 = vcmp.lt.s32.totalorder %v731_v54, 1  ;;  %vm752_vm2 = vcmp.lt.s32.totalorder %v731_v54, 3 }
  0x9e   :  { %v736_v9 = vshrl.u32 %v3876_v1, %v733_v60  ;;  %v739_v10 = vshrl.u32 %v3882_v3, %v733_v60  ;;  %v742_v11 = vshrl.u32 %v3886_v5, %v733_v60  ;;  %v734_v12 = vshrl.u32 %v3868_v61, %v733_v60 }
  0x9f   :  { %v745_v13 = vshrl.u32 %v3864_v7, %v733_v60  ;;  %v748_v15 = vshrl.u32 %v3862_v14, %v733_v60  ;;  %vm753_vm4 = vcmp.lt.s32.totalorder %v731_v54, 4  ;;  %vm751_vm5 = vcmp.lt.s32.totalorder %v731_v54, 2 }
  0xa0   :  { %v737_v16 = vor.u32 %v736_v9, %v735_v62  ;;  %v740_v17 = vor.u32 %v739_v10, %v738_v2  ;;  %v743_v18 = vor.u32 %v742_v11, %v741_v4  ;;  %v830_v62 = vor.u32 8388608, %v2343_v59 }
  0xa1   :  { %v746_v19 = vor.u32 %v745_v13, %v744_v6  ;;  %v749_v20 = vor.u32 %v748_v15, %v747_v8  ;;  %v837_v54 = vsub.s32 32, %v836_v37  ;;  %v839_v2 = vshll.u32 %v3868_v61, %v836_v37 }
  0xa2   :  { %v754_v25 = vsel %vm750_vm1, %v734_v12, %v737_v16  ;;  %v755_v26 = vsel %vm753_vm4, %v743_v18, 2102212464  ;;  %v758_v29 = vsel %vm750_vm1, %v737_v16, %v740_v17  ;;  %v762_v30 = vsel %vm750_vm1, %v740_v17, %v743_v18 }
  0xa3   :  { %v756_v31 = vsel %vm752_vm2, %v740_v17, %v755_v26  ;;  %v759_v32 = vsel %vm753_vm4, %v746_v19, 920167782  ;;  %v763_v33 = vsel %vm753_vm4, %v749_v20, 1326507024  ;;  %v842_v4 = vshll.u32 %v3876_v1, %v836_v37 }
  0xa4   :  { %v760_v35 = vsel %vm752_vm2, %v743_v18, %v759_v32  ;;  %v764_v36 = vsel %vm752_vm2, %v746_v19, %v763_v33  ;;  %v757_v43 = vsel %vm751_vm5, %v754_v25, %v756_v31  ;;  %v845_v6 = vshll.u32 %v3882_v3, %v836_v37 }
  0xa5   :  { %v761_v44 = vsel %vm751_vm5, %v758_v29, %v760_v35  ;;  %v765_v46 = vsel %vm751_vm5, %v762_v30, %v764_v36  ;;  %v773_v52 = vmul.u32 %v2339_v58, %v757_v43  ;;  %v840_v8 = vshrl.u32 %v3876_v1, %v837_v54 }
  0xa6   :  { %v2366_v48 = vmul.u32.u64.low %v2339_v58, %v765_v46  ;;  %v2367_v50 = vmul.u32.u64.high %v2339_v58, %v765_v46, %v2366_v48  ;;  %v2370_v55 = vmul.u32.u64.low %v2339_v58, %v761_v44  ;;  %v2371_v60 = vmul.u32.u64.high %v2339_v58, %v761_v44, %v2370_v55 }
  0xa7   :  { %v843_v9 = vshrl.u32 %v3882_v3, %v837_v54  ;;  %v846_v10 = vshrl.u32 %v3886_v5, %v837_v54  ;;  %v848_v59 = vshll.u32 %v3886_v5, %v836_v37  ;;  %v849_v58 = vshrl.u32 %v3864_v7, %v837_v54 }
  0xa8   :  { %vm775_vm6 = vc.u32 %v2367_v50, %v2370_v55  ;;  %v776_v11 = vadd.s32 1, %v2371_v60  ;;  %v851_v12 = vshll.u32 %v3864_v7, %v836_v37  ;;  %v841_v13 = vor.u32 %v840_v8, %v839_v2 }
  0xa9   :  { %v844_v15 = vor.u32 %v843_v9, %v842_v4  ;;  %v847_v16 = vor.u32 %v846_v10, %v845_v6  ;;  %v852_v17 = vshrl.u32 %v3862_v14, %v837_v54  ;;  %v850_v19 = vor.u32 %v849_v58, %v848_v59 }
  0xaa   :  { %v777_v18 = vsel %vm775_vm6, %v776_v11, %v2371_v60  ;;  %v2392_v20 = vshll.u32 %v830_v62, 8  ;;  %vm854_vm7 = vcmp.lt.s32.totalorder %v2375_v63, 1  ;;  %vm857_vm8 = vcmp.lt.s32.totalorder %v2375_v63, 4 }
  0xab   :  { %v778_v25 = vadd.s32 %v777_v18, %v773_v52  ;;  %v853_v26 = vor.u32 %v852_v17, %v851_v12  ;;  %vm856_vm9 = vcmp.lt.s32.totalorder %v2375_v63, 3  ;;  %v862_v29 = vsel %vm854_vm7, %v841_v13, %v844_v15 }
  0xac   :  { %v863_v30 = vsel %vm857_vm8, %v850_v19, 920167782  ;;  %v866_v31 = vsel %vm854_vm7, %v844_v15, %v847_v16  ;;  %vm855_vm10 = vcmp.lt.s32.totalorder %v2375_v63, 2  ;;  %v306_v35 = vshrl.u32 %v305_v53, 23 }
  0xad   :  { %v779_v32 = vadd.s32 536870912, %v778_v25  ;;  %v864_v33 = vsel %vm856_vm9, %v847_v16, %v863_v30  ;;  %v867_v34 = vsel %vm857_vm8, %v853_v26, 1326507024  ;;  %vm521_vm11 = vcmp.gt.s32.totalorder %v520_v21, 0 }
  0xae   :  { %v865_v36 = vsel %vm855_vm10, %v862_v29, %v864_v33  ;;  %v868_v37 = vsel %vm856_vm9, %v850_v19, %v867_v34  ;;  %v410_v53 = vshrl.u32 %v409_v57, 23  ;;  %v522_v52 = vsel %vm521_vm11, %v520_v21, 0 }
  0xaf   :  { %v2414_v43 = vshrl.u32 %v779_v32, 30  ;;  %v869_v44 = vsel %vm855_vm10, %v866_v31, %v868_v37  ;;  %v2419_v46 = vmul.u32.u64.low %v2392_v20, %v865_v36  ;;  %v2420_v48 = vmul.u32.u64.high %v2392_v20, %v865_v36, %v2419_v46 }
  0xb0   :  { %v2427_v60 = vmul.u32.u64.low %v2392_v20, %v869_v44  ;;  %v2428_v62 = vmul.u32.u64.high %v2392_v20, %v869_v44, %v2427_v60  ;;  %v859_v2 = vsel %vm857_vm8, %v847_v16, 2102212464  ;;  %v106_v4 = vsel %vm105_vm12, %v2336_v56, 0 }
  0xb1   :  { %3904 = vst [vmem:[#allocation7_spill] sm:$0xff] %v2414_v43  ;;  %v781_v0 = vshll.u32 %v2414_v43, 30  ;;  %v838_v6 = vshrl.u32 %v3868_v61, %v837_v54  ;;  %v1982_v8 = vadd.s32 4294967169, %v306_v35  ;;  %v1986_v9 = vadd.s32 4294967169, %v410_v53 }
  0xb2   :  { %v524_v10 = vand.u32 31, %v522_v52  ;;  %v206_v57 = vor.u32 8388608, %v2333_v51  ;;  %v210_v59 = vsel %vm209_vm13, %v2363_v42, 0  ;;  %v860_v12 = vsel %vm856_vm9, %v844_v15, %v859_v2 }
  0xb3   :  { %v2438_v11 = vsub.s32 %v778_v25, %v781_v0  ;;  %v858_v58 = vsel %vm854_vm7, %v838_v6, %v841_v13  ;;  %v2444_v16 = vand.u32 31, %v106_v4  ;;  %v880_v56 = vadd.s32 1, %v2420_v48 }
  0xb4   :  { %v3860_v54 = vand.u32 2147483647, %v2324_v45  ;;  %vm879_vm14 = vc.u32 %v2428_v62, %v2419_v46  ;;  %v2450_v51 = vand.u32 31, %v210_v59  ;;  %v312_v42 = vadd.s32 1, %v1982_v8 }
  0xb5   :  { %v861_v17 = vsel %vm855_vm10, %v858_v58, %v860_v12  ;;  %v2454_v18 = vsub.s32 32, %v524_v10  ;;  %v416_v13 = vadd.s32 1, %v1986_v9  ;;  %v784_v15 = vsub.s32 0, %v2438_v11 }
  0xb6   :  { %v2457_v19 = vshll.u32 %v206_v57, 8  ;;  %v2461_v25 = vsub.s32 32, %v2444_v16  ;;  %v881_v26 = vsel %vm879_vm14, %v880_v56, %v2420_v48  ;;  %v2466_v29 = vsub.f32 %v2317_v38, %v2322_v41 }
  0xb7   :  { %v2470_v63 = vand.u32 8388607, %v3860_v54  ;;  %v2472_v30 = vshrl.u32 %v106_v4, 5  ;;  %v120_v31 = vshll.u32 %v3886_v5, %v2444_v16  ;;  %v2476_v32 = vshrl.u32 %v210_v59, 5 }
  0xb8   :  { %3905 = vst [vmem:[#allocation8_spill] sm:$0xff] %v2466_v29  ;;  %v877_v33 = vmul.u32 %v2392_v20, %v861_v17  ;;  %v2481_v34 = vshll.u32 %v3864_v7, %v2444_v16  ;;  %v2484_v38 = vsub.s32 32, %v2450_v51  ;;  %vm313_vm15 = vcmp.gt.s32.totalorder %v312_v42, 0 }
  0xb9   :  { %v540_v41 = vshrl.u32 %v3862_v14, %v2454_v18  ;;  %vm417_vm0 = vcmp.gt.s32.totalorder %v416_v13, 0  ;;  %v1999_v35 = vmin.u32 %v784_v15, %v2438_v11  ;;  %v537_v37 = vshrl.u32 %v3864_v7, %v2454_v18 }
  0xba   :  { %v2489_v36 = vadd.s32 %v881_v26, %v877_v33  ;;  %v121_v20 = vshrl.u32 %v3864_v7, %v2461_v25  ;;  %v3858_v44 = vand.u32 2147483647, %v2329_v49  ;;  %v539_v48 = vshll.u32 %v3864_v7, %v524_v10 }
  0xbb   :  { %v617_v53 = vand.u32 2139095040, %v2466_v29  ;;  %v2498_v60 = vshrl.u32 %v522_v52, 5  ;;  %v531_v0 = vshrl.u32 %v3882_v3, %v2454_v18  ;;  %v534_v2 = vshrl.u32 %v3886_v5, %v2454_v18 }
  0xbc   :  { %v536_v4 = vshll.u32 %v3886_v5, %v524_v10  ;;  %v314_v6 = vsel %vm313_vm15, %v312_v42, 0  ;;  %v528_v8 = vshrl.u32 %v3876_v1, %v2454_v18  ;;  %v530_v9 = vshll.u32 %v3876_v1, %v524_v10 }
  0xbd   :  { %v541_v57 = vor.u32 %v540_v41, %v539_v48  ;;  %v786_v59 = vclz %v1999_v35  ;;  %v883_v58 = vadd.s32 536870912, %v2489_v36  ;;  %v533_v52 = vshll.u32 %v3882_v3, %v524_v10 }
  0xbe   :  { %v538_v12 = vor.u32 %v537_v37, %v536_v4  ;;  %v2512_v56 = vshrl.u32 %v3862_v14, %v2461_v25  ;;  %v418_v17 = vsel %vm417_vm0, %v416_v13, 0  ;;  %v527_v42 = vshll.u32 %v3868_v61, %v524_v10 }
  0xbf   :  { %v618_v15 = vshrl.u32 %v617_v53, 23  ;;  %v517_v26 = vand.u32 8388607, %v3858_v44  ;;  %v532_v33 = vor.u32 %v531_v0, %v530_v9  ;;  %v535_v41 = vor.u32 %v534_v2, %v533_v52 }
  0xc0   :  { %vm545_vm1 = vcmp.lt.s32.totalorder %v2498_v60, 4  ;;  %v2519_v35 = vshrl.u32 %v314_v6, 5  ;;  %v529_v48 = vor.u32 %v528_v8, %v527_v42  ;;  %v2523_v47 = vand.u32 31, %v314_v6 }
  0xc1   :  { %v555_v37 = vsel %vm545_vm1, %v541_v57, 1326507024  ;;  %v1994_v4 = vadd.s32 4294967169, %v618_v15  ;;  %v2000_v13 = vadd.s32 4294967294, %v786_v59  ;;  %v2525_v27 = vshrl.u32 %v883_v58, 30 }
  0xc2   :  { %3906 = vst [vmem:[#allocation9_spill] sm:$0xff] %v2523_v47  ;;  %v551_v10 = vsel %vm545_vm1, %v538_v12, 920167782  ;;  %v2529_v53 = vshrl.u32 %v418_v17, 5  ;;  %vm542_vm2 = vcmp.lt.s32.totalorder %v2498_v60, 1  ;;  %vm544_vm3 = vcmp.lt.s32.totalorder %v2498_v60, 3 }
  0xc3   :  { %3907 = vst [vmem:[#allocation10_spill] sm:$0xff] %v2525_v27  ;;  %v624_v0 = vadd.s32 1, %v1994_v4  ;;  %v2533_v2 = vand.u32 31, %v418_v17  ;;  %v518_v8 = vor.u32 8388608, %v517_v26  ;;  %v554_v6 = vsel %vm542_vm2, %v532_v33, %v535_v41 }
  0xc4   :  { %v556_v9 = vsel %vm544_vm3, %v538_v12, %v555_v37  ;;  %vm543_vm4 = vcmp.lt.s32.totalorder %v2498_v60, 2  ;;  %v550_v57 = vsel %vm542_vm2, %v529_v48, %v532_v33  ;;  %v552_v59 = vsel %vm544_vm3, %v535_v41, %v551_v10 }
  0xc5   :  { %vm625_vm5 = vcmp.gt.s32.totalorder %v624_v0, 0  ;;  %vm2001_vm6 = vcmp.lt.s32.totalorder %v2000_v13, 0  ;;  %v885_v58 = vshll.u32 %v2525_v27, 30  ;;  %v547_v52 = vsel %vm545_vm1, %v535_v41, 2102212464 }
  0xc6   :  { %v626_v17 = vsel %vm625_vm5, %v624_v0, 0  ;;  %v2547_v42 = vor.u32 %v121_v20, %v120_v31  ;;  %v526_v15 = vshrl.u32 %v3868_v61, %v2454_v18  ;;  %v557_v26 = vsel %vm543_vm4, %v554_v6, %v556_v9 }
  0xc7   :  { %v553_v37 = vsel %vm543_vm4, %v550_v57, %v552_v59  ;;  %v2557_v4 = vshll.u32 %v518_v8, 8  ;;  %v3859_v10 = vand.u32 2147483647, %v2466_v29  ;;  %v628_v41 = vand.u32 31, %v626_v17 }
  0xc8   :  { %v2561_v31 = vsub.s32 32, %v2523_v47  ;;  %v2563_v20 = vsel %vm2001_vm6, 0, %v2000_v13  ;;  %v546_v0 = vsel %vm542_vm2, %v526_v15, %v529_v48  ;;  %v548_v18 = vsel %vm544_vm3, %v532_v33, %v547_v52 }
  0xc9   :  { %v2570_v6 = vsub.s32 %v2489_v36, %v885_v58  ;;  %v2573_v8 = vmul.u32.u64.low %v2557_v4, %v557_v26  ;;  %v2574_v9 = vmul.u32.u64.high %v2557_v4, %v557_v26, %v2573_v8  ;;  %v629_v57 = vsub.s32 32, %v628_v41 }
  0xca   :  { %3908 = vst [vmem:[#allocation11_spill] sm:$0xff] %v2561_v31  ;;  %v2578_v59 = vshll.u32 %v3886_v5, %v2523_v47  ;;  %v2582_v13 = vshll.u32 %v3864_v7, %v2523_v47  ;;  %v2585_v48 = vmul.u32.u64.low %v2557_v4, %v553_v37  ;;  %v2586_v15 = vmul.u32.u64.high %v2557_v4, %v553_v37, %v2585_v48 }
  0xcb   :  { %v621_v36 = vand.u32 8388607, %v3859_v10  ;;  %v632_v33 = vshrl.u32 %v3876_v1, %v629_v57  ;;  %v635_v58 = vshrl.u32 %v3882_v3, %v629_v57  ;;  %v215_v52 = vshll.u32 %v3868_v61, %v2450_v51 }
  0xcc   :  { %3909 = vst [vmem:[#allocation12_spill] sm:$0xff] %v2585_v48  ;;  %v794_v26 = vsub.s32 4294967266, %v2563_v20  ;;  %v2598_v8 = vsel %vm543_vm4, %v546_v0, %v548_v18  ;;  %v631_v37 = vshll.u32 %v3868_v61, %v628_v41  ;;  %v216_v44 = vshrl.u32 %v3876_v1, %v2484_v38 }
  0xcd   :  { %v888_v10 = vsub.s32 0, %v2570_v6  ;;  %v634_v54 = vshll.u32 %v3876_v1, %v628_v41  ;;  %v637_v39 = vshll.u32 %v3882_v3, %v628_v41  ;;  %v638_v21 = vshrl.u32 %v3886_v5, %v629_v57 }
  0xce   :  { %v627_v12 = vshrl.u32 %v626_v17, 5  ;;  %v633_v14 = vor.u32 %v632_v33, %v631_v37  ;;  %v640_v7 = vshll.u32 %v3886_v5, %v628_v41  ;;  %v3910_v60 = vmov 920167782  }
  0xcf   :  { %v641_v0 = vshrl.u32 %v3910_v60, %v629_v57  ;;  %v636_v18 = vor.u32 %v635_v58, %v634_v54  ;;  %v639_v43 = vor.u32 %v638_v21, %v637_v39  ;;  %v643_v61 = vshll.u32 %v3910_v60, %v628_v41 }
  0xd0   :  { %v3911_v27 = vmov 1326507024   ;;  %v565_v29 = vmul.u32 %v2557_v4, %v2598_v8  ;;  %v622_v1 = vor.u32 8388608, %v621_v36  ;;  %v219_v45 = vshrl.u32 %v3882_v3, %v2484_v38 }
  0xd1   :  { %v644_v49 = vshrl.u32 %v3911_v27, %v629_v57  ;;  %v642_v28 = vor.u32 %v641_v0, %v640_v7  ;;  %vm567_vm7 = vc.u32 %v2574_v9, %v2585_v48  ;;  %v217_v33 = vor.u32 %v216_v44, %v215_v52 }
  0xd2   :  { %v3912_v54 = vmov 2475754826   ;;  %v568_v21 = vadd.s32 1, %v2586_v15  ;;  %vm646_vm8 = vcmp.lt.s32.totalorder %v627_v12, 1  ;;  %vm648_vm9 = vcmp.lt.s32.totalorder %v627_v12, 3 }
  0xd3   :  { %v645_v17 = vor.u32 %v644_v49, %v643_v61  ;;  %v218_v39 = vshll.u32 %v3912_v54, %v2450_v51  ;;  %vm649_vm10 = vcmp.lt.s32.totalorder %v627_v12, 4  ;;  %v654_v4 = vsel %vm646_vm8, %v633_v14, %v636_v18 }
  0xd4   :  { %v655_v41 = vsel %vm649_vm10, %v642_v28, 920167782  ;;  %v658_v7 = vsel %vm646_vm8, %v636_v18, %v639_v43  ;;  %v662_v8 = vshll.u32 %v622_v1, 8  ;;  %v222_v49 = vshrl.u32 %v3886_v5, %v2484_v38 }
  0xd5   :  { %v659_v36 = vsel %vm649_vm10, %v645_v17, 1326507024  ;;  %v656_v58 = vsel %vm648_vm9, %v639_v43, %v655_v41  ;;  %v220_v37 = vor.u32 %v219_v45, %v218_v39  ;;  %vm647_vm11 = vcmp.lt.s32.totalorder %v627_v12, 2 }
  0xd6   :  { %v651_v61 = vsel %vm649_vm10, %v639_v43, 2102212464  ;;  %v660_v44 = vsel %vm648_vm9, %v642_v28, %v659_v36  ;;  %v225_v52 = vshrl.u32 %v3910_v60, %v2484_v38  ;;  %v3913_v0 = vmov 683565275  }
  0xd7   :  { %v630_v3 = vshrl.u32 %v3913_v0, %v629_v57  ;;  %v657_v47 = vsel %vm647_vm11, %v654_v4, %v656_v58  ;;  %v661_v17 = vsel %vm647_vm11, %v658_v7, %v660_v44  ;;  %v228_v1 = vshrl.u32 %v3911_v27, %v2484_v38 }
  0xd8   :  { %v2633_v45 = vmul.u32.u64.low %v662_v8, %v661_v17  ;;  %v2634_v39 = vmul.u32.u64.high %v662_v8, %v661_v17, %v2633_v45  ;;  %v3915_v41 = vmov 2131351028   ;;  %v224_v28 = vshll.u32 %v3886_v5, %v2450_v51 }
  0xd9   :  { %v221_v43 = vshll.u32 %v3915_v41, %v2450_v51  ;;  %v569_v57 = vsel %vm567_vm7, %v568_v21, %v2586_v15  ;;  %v650_v4 = vsel %vm646_vm8, %v630_v3, %v633_v14  ;;  %v652_v7 = vsel %vm648_vm9, %v636_v18, %v651_v61 }
  0xda   :  { %3914 = vst [vmem:[#allocation13_spill] sm:$0xff] %v2634_v39  ;;  %v227_v36 = vshll.u32 %v3910_v60, %v2450_v51  ;;  %vm129_vm12 = vcmp.lt.s32.totalorder %v2472_v30, 4  ;;  %v2649_v58 = vmul.u32.u64.low %v662_v8, %v657_v47  ;;  %v2650_v44 = vmul.u32.u64.high %v662_v8, %v657_v47, %v2649_v58 }
  0xdb   :  { %v223_v17 = vor.u32 %v222_v49, %v221_v43  ;;  %v226_v45 = vor.u32 %v225_v52, %v224_v28  ;;  %v2654_v5 = vsub.s32 32, %v2533_v2  ;;  %v2656_v40 = vadd.s32 127, %v794_v26 }
  0xdc   :  { %3916 = vst [vmem:[#allocation14_spill] sm:$0xff] %v2649_v58  ;;  %v214_v3 = vshrl.u32 %v3913_v0, %v2484_v38  ;;  %v229_v14 = vor.u32 %v228_v1, %v227_v36  ;;  %v2003_v15 = vmin.u32 %v888_v10, %v2570_v6  ;;  %v2661_v51 = vadd.s32 %v569_v57, %v565_v29 }
  0xdd   :  { %v653_v18 = vsel %vm647_vm11, %v650_v4, %v652_v7  ;;  %vm230_vm13 = vcmp.lt.s32.totalorder %v2476_v32, 1  ;;  %vm671_vm14 = vc.u32 %v2634_v39, %v2649_v58  ;;  %vm232_vm15 = vcmp.lt.s32.totalorder %v2476_v32, 3 }
  0xde   :  { %vm233_vm0 = vcmp.lt.s32.totalorder %v2476_v32, 4  ;;  %v238_v47 = vsel %vm230_vm13, %v217_v33, %v220_v37  ;;  %v672_v38 = vadd.s32 1, %v2650_v44  ;;  %v242_v29 = vsel %vm230_vm13, %v220_v37, %v223_v17 }
  0xdf   :  { %v235_v26 = vsel %vm233_vm0, %v223_v17, 2102212464  ;;  %v239_v10 = vsel %vm233_vm0, %v226_v45, 920167782  ;;  %v669_v12 = vmul.u32 %v662_v8, %v653_v18  ;;  %vm231_vm1 = vcmp.lt.s32.totalorder %v2476_v32, 2 }
  0xe0   :  { %v240_v21 = vsel %vm232_vm15, %v223_v17, %v239_v10  ;;  %v243_v49 = vsel %vm233_vm0, %v229_v14, 1326507024  ;;  %v571_v61 = vadd.s32 536870912, %v2661_v51  ;;  %v673_v52 = vsel %vm671_vm14, %v672_v38, %v2650_v44 }
  0xe1   :  { %v241_v1 = vsel %vm231_vm1, %v238_v47, %v240_v21  ;;  %v244_v43 = vsel %vm232_vm15, %v226_v45, %v243_v49  ;;  %v2683_v28 = vadd.s32 %v673_v52, %v669_v12  ;;  %v234_v8 = vsel %vm230_vm13, %v214_v3, %v217_v33 }
  0xe2   :  { %v236_v57 = vsel %vm232_vm15, %v220_v37, %v235_v26  ;;  %v245_v4 = vsel %vm231_vm1, %v242_v29, %v244_v43  ;;  %v2696_v44 = vmul.u32.u64.low %v2457_v19, %v241_v1  ;;  %v2697_v17 = vmul.u32.u64.high %v2457_v19, %v241_v1, %v2696_v44 }
  0xe3   :  { %v2692_v7 = vmul.u32.u64.low %v2457_v19, %v245_v4  ;;  %v2693_v36 = vmul.u32.u64.high %v2457_v19, %v245_v4, %v2692_v7  ;;  %v2703_v45 = vsel %vm129_vm12, %v2547_v42, 920167782  ;;  %v2707_v33 = vshrl.u32 %v3910_v60, %v2561_v31 }
  0xe4   :  { %v2711_v37 = vshrl.u32 %v3911_v27, %v2561_v31  ;;  %v774_v3 = vadd.s32 %v2370_v55, %v2367_v50  ;;  %v790_v14 = vsub.s32 32, %v2563_v20  ;;  %v791_v18 = vshll.u32 %v2438_v11, %v2563_v20 }
  0xe5   :  { %v675_v47 = vadd.s32 536870912, %v2683_v28  ;;  %v237_v38 = vsel %vm231_vm1, %v234_v8, %v236_v57  ;;  %v796_v26 = vshll.u32 %v2656_v40, 23  ;;  %v890_v10 = vclz %v2003_v15 }
  0xe6   :  { %v2722_v29 = vshrl.u32 %v571_v61, 30  ;;  %v424_v12 = vshrl.u32 %v3912_v54, %v2654_v5  ;;  %vm255_vm2 = vc.u32 %v2693_v36, %v2696_v44  ;;  %v256_v50 = vadd.s32 1, %v2697_v17 }
  0xe7   :  { %v427_v55 = vshrl.u32 %v3915_v41, %v2654_v5  ;;  %v3917_v11 = vmov 2102212464   ;;  %v253_v20 = vmul.u32 %v2457_v19, %v237_v38  ;;  %v423_v40 = vshll.u32 %v3913_v0, %v2533_v2 }
  0xe8   :  { %v430_v32 = vshrl.u32 %v3917_v11, %v2654_v5  ;;  %v426_v15 = vshll.u32 %v3912_v54, %v2533_v2  ;;  %v429_v21 = vshll.u32 %v3915_v41, %v2533_v2  ;;  %v2740_v49 = vshrl.u32 %v675_v47, 30 }
  0xe9   :  { %v257_v61 = vsel %vm255_vm2, %v256_v50, %v2697_v17  ;;  %v432_v52 = vshll.u32 %v3917_v11, %v2533_v2  ;;  %v433_v1 = vshrl.u32 %v3910_v60, %v2654_v5  ;;  %v792_v19 = vshrl.u32 %v774_v3, %v790_v14 }
  0xea   :  { %v258_v43 = vadd.s32 %v257_v61, %v253_v20  ;;  %v435_v8 = vshll.u32 %v3910_v60, %v2533_v2  ;;  %v436_v57 = vshrl.u32 %v3911_v27, %v2654_v5  ;;  %v425_v4 = vor.u32 %v424_v12, %v423_v40 }
  0xeb   :  { %v428_v7 = vor.u32 %v427_v55, %v426_v15  ;;  %v431_v47 = vor.u32 %v430_v32, %v429_v21  ;;  %v434_v38 = vor.u32 %v433_v1, %v432_v52  ;;  %v2004_v58 = vadd.s32 4294967294, %v890_v10 }
  0xec   :  { %v573_v17 = vshll.u32 %v2722_v29, 30  ;;  %v259_v50 = vadd.s32 536870912, %v258_v43  ;;  %v437_v39 = vor.u32 %v436_v57, %v435_v8  ;;  %v797_v31 = vor.u32 4788187, %v796_v26 }
  0xed   :  { %v677_v48 = vshll.u32 %v2740_v49, 30  ;;  %v414_v3 = vor.u32 8388608, %v2470_v63  ;;  %vm441_vm3 = vcmp.lt.s32.totalorder %v2529_v53, 4  ;;  %vm438_vm4 = vcmp.lt.s32.totalorder %v2529_v53, 1 }
  0xee   :  { %v2755_v2 = vshrl.u32 %v259_v50, 30  ;;  %vm440_vm5 = vcmp.lt.s32.totalorder %v2529_v53, 3  ;;  %v447_v14 = vsel %vm441_vm3, %v434_v38, 920167782  ;;  %v446_v10 = vsel %vm438_vm4, %v425_v4, %v428_v7 }
  0xef   :  { %v448_v12 = vsel %vm440_vm5, %v431_v47, %v447_v14  ;;  %v450_v26 = vsel %vm438_vm4, %v428_v7, %v431_v47  ;;  %v451_v55 = vsel %vm441_vm3, %v437_v39, 1326507024  ;;  %vm337_vm6 = vcmp.lt.s32.totalorder %v2519_v35, 4 }
  0xf0   :  { %vm2005_vm7 = vcmp.lt.s32.totalorder %v2004_v58, 0  ;;  %v2767_v63 = vsub.s32 %v2661_v51, %v573_v17  ;;  %v261_v32 = vshll.u32 %v2755_v2, 30  ;;  %v422_v20 = vshrl.u32 %v3913_v0, %v2654_v5 }
  0xf1   :  { %vm439_vm8 = vcmp.lt.s32.totalorder %v2529_v53, 2  ;;  %v443_v40 = vsel %vm441_vm3, %v431_v47, 2102212464  ;;  %v452_v15 = vsel %vm440_vm5, %v434_v38, %v451_v55  ;;  %v454_v21 = vshll.u32 %v414_v3, 8 }
  0xf2   :  { %v2776_v39 = vsub.s32 %v2683_v28, %v677_v48  ;;  %v2778_v61 = vsub.s32 %v258_v43, %v261_v32  ;;  %v449_v51 = vsel %vm439_vm8, %v446_v10, %v448_v12  ;;  %v453_v52 = vsel %vm439_vm8, %v450_v26, %v452_v15 }
  0xf3   :  { %v793_v1 = vor.u32 %v792_v19, %v791_v18  ;;  %v893_v5 = vsel %vm2005_vm7, 0, %v2004_v58  ;;  %v2784_v8 = vmul.u32.u64.low %v454_v21, %v453_v52  ;;  %v2785_v57 = vmul.u32.u64.high %v454_v21, %v453_v52, %v2784_v8 }
  0xf4   :  { %v576_v47 = vsub.s32 0, %v2767_v63  ;;  %v264_v38 = vsub.s32 0, %v2778_v61  ;;  %v442_v48 = vsel %vm438_vm4, %v422_v20, %v425_v4  ;;  %v444_v28 = vsel %vm440_vm5, %v428_v7, %v443_v40 }
  0xf5   :  { %v2795_v43 = vor.u32 %v2707_v33, %v2578_v59  ;;  %v798_v17 = vand.u32 2147483647, %v797_v31  ;;  %v2797_v18 = vmul.u32.u64.low %v454_v21, %v449_v51  ;;  %v2798_v58 = vmul.u32.u64.high %v454_v21, %v449_v51, %v2797_v18 }
  0xf6   :  { %v3918_v19 = vor.u32 %v2512_v56, %v2481_v34  ;;  %v894_v4 = vsub.s32 32, %v893_v5  ;;  %v680_v3 = vsub.s32 0, %v2776_v39  ;;  %v1979_v7 = vmin.u32 %v264_v38, %v2778_v61 }
  0xf7   :  { %v333_v59 = vor.u32 %v2711_v37, %v2582_v13  ;;  %v800_v31 = vcvt.s32.f32 %v793_v1  ;;  %v898_v33 = vsub.s32 4294967266, %v893_v5  ;;  %v445_v14 = vsel %vm439_vm8, %v442_v48, %v444_v28 }
  0xf8   :  { %v2806_v50 = vsel %vm129_vm12, %v3918_v19, 1326507024  ;;  %v878_v34 = vadd.s32 %v2419_v46, %v2428_v62  ;;  %v1991_v56 = vmin.u32 %v576_v47, %v2767_v63  ;;  %v266_v10 = vclz %v1979_v7 }
  0xf9   :  { %vm463_vm9 = vc.u32 %v2785_v57, %v2797_v18  ;;  %v2822_v12 = vsel %vm337_vm6, %v2795_v43, 920167782  ;;  %v2824_v26 = vmul.f32 %v800_v31, %v798_v17  ;;  %v895_v55 = vshll.u32 %v2570_v6, %v893_v5 }
  0xfa   :  { %v464_v53 = vadd.s32 1, %v2798_v58  ;;  %v896_v32 = vshrl.u32 %v878_v34, %v894_v4  ;;  %v1995_v46 = vmin.u32 %v680_v3, %v2776_v39  ;;  %v1980_v62 = vadd.s32 4294967294, %v266_v10 }
  0xfb   :  { %v461_v20 = vmul.u32 %v454_v21, %v445_v14  ;;  %v899_v40 = vadd.s32 127, %v898_v33  ;;  %v112_v51 = vshrl.u32 %v3912_v54, %v2461_v25  ;;  %v115_v52 = vshrl.u32 %v3915_v41, %v2461_v25 }
  0xfc   :  { %v465_v15 = vsel %vm463_vm9, %v464_v53, %v2798_v58  ;;  %v578_v1 = vclz %v1991_v56  ;;  %v254_v6 = vadd.s32 %v2696_v44, %v2693_v36  ;;  %vm1981_vm10 = vcmp.lt.s32.totalorder %v1980_v62, 0 }
  0xfd   :  { %v466_v5 = vadd.s32 %v465_v15, %v461_v20  ;;  %v269_v8 = vsel %vm1981_vm10, 0, %v1980_v62  ;;  %v111_v47 = vshll.u32 %v3913_v0, %v2444_v16  ;;  %v114_v21 = vshll.u32 %v3912_v54, %v2444_v16 }
  0xfe   :  { %v118_v38 = vshrl.u32 %v3917_v11, %v2461_v25  ;;  %v682_v48 = vclz %v1995_v46  ;;  %v270_v28 = vsub.s32 32, %v269_v8  ;;  %v274_v17 = vsub.s32 4294967266, %v269_v8 }
  0xff   :  { %v117_v58 = vshll.u32 %v3915_v41, %v2444_v16  ;;  %v467_v19 = vadd.s32 536870912, %v466_v5  ;;  %v3919_v36 = vand.u32 2147483647, %v2302_v22  ;;  %v113_v4 = vor.u32 %v112_v51, %v111_v47 }
 0x100   :  { %v116_v3 = vor.u32 %v115_v52, %v114_v21  ;;  %v271_v7 = vshll.u32 %v2778_v61, %v269_v8  ;;  %v272_v31 = vshrl.u32 %v254_v6, %v270_v28  ;;  %v275_v33 = vadd.s32 127, %v274_v17 }
 0x101   :  { %v101_v44 = vand.u32 8388607, %v3919_v36  ;;  %v119_v14 = vor.u32 %v118_v38, %v117_v58  ;;  %v802_v34 = vxor.u32 2147483648, %v2824_v26  ;;  %v2848_v56 = vor.u32 %v896_v32, %v895_v55 }
 0x102   :  { %v900_v10 = vshll.u32 %v899_v40, 23  ;;  %v2850_v53 = vshrl.u32 %v467_v19, 30  ;;  %v1992_v46 = vadd.s32 4294967294, %v578_v1  ;;  %v1996_v16 = vadd.s32 4294967294, %v682_v48 }
 0x103   :  { %v273_v62 = vor.u32 %v272_v31, %v271_v7  ;;  %v276_v20 = vshll.u32 %v275_v33, 23  ;;  %vm720_vm11 = vcmp.lt.s32.totalorder %v2304_v23, 0  ;;  %v102_v51 = vor.u32 8388608, %v101_v44 }
 0x104   :  { %v469_v15 = vshll.u32 %v2850_v53, 30  ;;  %vm126_vm13 = vcmp.lt.s32.totalorder %v2472_v30, 1  ;;  %vm128_vm14 = vcmp.lt.s32.totalorder %v2472_v30, 3  ;;  %v110_v1 = vshrl.u32 %v3913_v0, %v2461_v25 }
 0x105   :  { %v277_v61 = vor.u32 4788187, %v276_v20  ;;  %v134_v55 = vsel %vm126_vm13, %v113_v4, %v116_v3  ;;  %v136_v32 = vsel %vm128_vm14, %v119_v14, %v2703_v45  ;;  %v138_v40 = vsel %vm126_vm13, %v116_v3, %v119_v14 }
 0x106   :  { %v2863_v52 = vsub.s32 %v466_v5, %v469_v15  ;;  %vm127_vm15 = vcmp.lt.s32.totalorder %v2472_v30, 2  ;;  %v140_v6 = vsel %vm128_vm14, %v2547_v42, %v2806_v50  ;;  %vm200_vm0 = vcmp.lt.s32.totalorder %v2306_v24, 0  ;;  %v3924_v15 = vld [vmem:[#allocation4_spill] sm:$0xff] }
 0x107   :  { %v278_v8 = vand.u32 2147483647, %v277_v61  ;;  %v280_v47 = vcvt.s32.f32 %v273_v62  ;;  %v131_v45 = vsel %vm129_vm12, %v119_v14, 2102212464  ;;  %v141_v5 = vsel %vm127_vm15, %v138_v40, %v140_v6  ;;  %v3925_v40 = vld [vmem:[#allocation11_spill] sm:$0xff] }
 0x108   :  { %vm1993_vm1 = vcmp.lt.s32.totalorder %v1992_v46, 0  ;;  %v472_v25 = vsub.s32 0, %v2863_v52  ;;  %v137_v21 = vsel %vm127_vm15, %v134_v55, %v136_v32  ;;  %v142_v38 = vshll.u32 %v102_v51, 8 }
 0x109   :  { %v2880_v48 = vor.u32 4788187, %v900_v10  ;;  %vm1997_vm2 = vcmp.lt.s32.totalorder %v1996_v16, 0  ;;  %v281_v42 = vmul.f32 %v280_v47, %v278_v8  ;;  %v130_v50 = vsel %vm126_vm13, %v110_v1, %v113_v4  ;;  %v3920_v4 = vld [vmem:[#allocation12_spill] sm:$0xff]  ;;  %v3926_v47 = vld [vmem:[#allocation9_spill] sm:$0xff] }
 0x10a   :  { %v1987_v28 = vmin.u32 %v472_v25, %v2863_v52  ;;  %v132_v17 = vsel %vm128_vm14, %v116_v3, %v131_v45  ;;  %v2887_v58 = vmul.u32.u64.low %v142_v38, %v141_v5  ;;  %v2888_v19 = vmul.u32.u64.high %v142_v38, %v141_v5, %v2887_v58 }
 0x10b   :  { %v347_v36 = vsel %vm337_vm6, %v333_v59, 1326507024  ;;  %v2895_v44 = vsel %vm1993_vm1, 0, %v1992_v46  ;;  %v2897_v7 = vmul.u32.u64.low %v142_v38, %v137_v21  ;;  %v2898_v31 = vmul.u32.u64.high %v142_v38, %v137_v21, %v2897_v7 }
 0x10c   :  { %v2903_v33 = vadd.s32 %v3920_v4, %v2574_v9  ;;  %v2905_v3 = vsel %vm1997_vm2, 0, %v1996_v16  ;;  %v3921_v14 = vand.u32 2147483647, %v2306_v24  ;;  %v282_v13 = vxor.u32 2147483648, %v281_v42 }
 0x10d   :  { %v474_v37 = vclz %v1987_v28  ;;  %v2916_v59 = vsel %vm720_vm11, %v802_v34, %v2824_v26  ;;  %v902_v46 = vand.u32 2147483647, %v2880_v48  ;;  %v904_v9 = vcvt.s32.f32 %v2848_v56  ;;  %v3934_v56 = vld [vmem:[#allocation8_spill] sm:$0xff] }
 0x10e   :  { %vm2909_vm12 = vcmp.le.f32.partialorder %v3921_v14, 0.7853982  ;;  %v133_v16 = vsel %vm127_vm15, %v130_v50, %v132_v17  ;;  %v582_v62 = vsub.s32 32, %v2895_v44  ;;  %vm151_vm3 = vc.u32 %v2888_v19, %v2897_v7 }
 0x10f   :  { %v1988_v20 = vadd.s32 4294967294, %v474_v37  ;;  %v302_v51 = vand.u32 2147483647, %v3924_v15  ;;  %v690_v61 = vsub.s32 4294967266, %v2905_v3  ;;  %v284_v26 = vsub.s32 4, %v2755_v2 }
 0x110   :  { %v462_v34 = vadd.s32 %v2797_v18, %v2785_v57  ;;  %v152_v55 = vadd.s32 1, %v2898_v31  ;;  %v283_v30 = vsel %vm200_vm0, %v282_v13, %v281_v42  ;;  %v149_v32 = vmul.u32 %v142_v38, %v133_v16 }
 0x111   :  { %vm1989_vm4 = vcmp.lt.s32.totalorder %v1988_v20, 0  ;;  %v320_v1 = vshrl.u32 %v3912_v54, %v3925_v40  ;;  %v322_v45 = vshll.u32 %v3912_v54, %v3926_v47  ;;  %v323_v5 = vshrl.u32 %v3915_v41, %v3925_v40 }
 0x112   :  { %v477_v6 = vsel %vm1989_vm4, 0, %v1988_v20  ;;  %v153_v8 = vsel %vm151_vm3, %v152_v55, %v2898_v31  ;;  %v309_v21 = vand.u32 8388607, %v302_v51  ;;  %v319_v38 = vshll.u32 %v3913_v0, %v3926_v47 }
 0x113   :  { %v478_v57 = vsub.s32 32, %v477_v6  ;;  %v482_v18 = vsub.s32 4294967266, %v477_v6  ;;  %v154_v25 = vadd.s32 %v153_v8, %v149_v32  ;;  %v324_v42 = vor.u32 %v323_v5, %v322_v45 }
 0x114   :  { %v325_v50 = vshll.u32 %v3915_v41, %v3926_v47  ;;  %v326_v28 = vshrl.u32 %v3917_v11, %v3925_v40  ;;  %v479_v17 = vshll.u32 %v2863_v52, %v477_v6  ;;  %v286_v14 = vsel %vm2909_vm12, %v2306_v24, %v283_v30  ;;  %v3927_v52 = vld [vmem:[#allocation5_spill] sm:$0xff] }
 0x115   :  { %v480_v58 = vshrl.u32 %v462_v34, %v478_v57  ;;  %v483_v31 = vadd.s32 127, %v482_v18  ;;  %v155_v4 = vadd.s32 536870912, %v154_v25  ;;  %v321_v13 = vor.u32 %v320_v1, %v319_v38 }
 0x116   :  { %v327_v37 = vor.u32 %v326_v28, %v325_v50  ;;  %vm334_vm5 = vcmp.lt.s32.totalorder %v2519_v35, 1  ;;  %vm336_vm7 = vcmp.lt.s32.totalorder %v2519_v35, 3  ;;  %v586_v32 = vsub.s32 4294967266, %v2895_v44 }
 0x117   :  { %v481_v16 = vor.u32 %v480_v58, %v479_v17  ;;  %v484_v20 = vshll.u32 %v483_v31, 23  ;;  %v2953_v55 = vshrl.u32 %v155_v4, 30  ;;  %vm408_vm8 = vcmp.lt.s32.totalorder %v3927_v52, 0 }
 0x118   :  { %v310_v34 = vor.u32 8388608, %v309_v21  ;;  %v346_v6 = vsel %vm334_vm5, %v324_v42, %v327_v37  ;;  %v348_v30 = vsel %vm336_vm7, %v2795_v43, %v347_v36  ;;  %v691_v1 = vadd.s32 127, %v690_v61 }
 0x119   :  { %v285_v8 = vsel %vm200_vm0, %v284_v26, %v2755_v2  ;;  %v3928_v47 = vand.u32 2147483647, %v3927_v52  ;;  %v485_v5 = vor.u32 4788187, %v484_v20  ;;  %v157_v57 = vshll.u32 %v2953_v55, 30 }
 0x11a   :  { %2149 = vcosq.f32 %v286_v14  ;;  %vm335_vm10 = vcmp.lt.s32.totalorder %v2519_v35, 2  ;;  %v342_v43 = vsel %vm334_vm5, %v321_v13, %v324_v42  ;;  %v344_v36 = vsel %vm336_vm7, %v327_v37, %v2822_v12 }
 0x11b   :  { %vm2968_vm9 = vcmp.le.f32.partialorder %v3928_v47, 0.7853982  ;;  %v486_v2 = vand.u32 2147483647, %v485_v5  ;;  %v488_v61 = vcvt.s32.f32 %v481_v16  ;;  %v2979_v26 = vsub.s32 %v154_v25, %v157_v57 }
 0x11c   :  { %v349_v18 = vsel %vm335_vm10, %v346_v6, %v348_v30  ;;  %2151 = vsinq.f32 %v286_v14  ;;  %v492_v21 = vsub.s32 4, %v2850_v53  ;;  %v339_v38 = vsel %vm337_vm6, %v327_v37, 2102212464  ;;  %v3932_v6 = vld [vmem:[#allocation14_spill] sm:$0xff] }
 0x11d   :  { %v350_v50 = vshll.u32 %v310_v34, 8  ;;  %v489_v28 = vmul.f32 %v488_v61, %v486_v2  ;;  %v160_v17 = vsub.s32 0, %v2979_v26  ;;  %v318_v12 = vshrl.u32 %v3913_v0, %v3925_v40  ;;  %v3931_v34 = vld [vmem:[#allocation13_spill] sm:$0xff] }
 0x11e   :  { %v345_v25 = vsel %vm335_vm10, %v342_v43, %v344_v36  ;;  %v686_v58 = vsub.s32 32, %v2905_v3  ;;  %v287_v31 = vsel %vm2909_vm12, 0, %v285_v8  ;;  %v340_v40 = vsel %vm336_vm7, %v324_v42, %v339_v38 }
 0x11f   :  { %v2994_v4 = vmul.u32.u64.low %v350_v50, %v349_v18  ;;  %v2995_v14 = vmul.u32.u64.high %v350_v50, %v349_v18, %v2994_v4  ;;  %v490_v16 = vxor.u32 2147483648, %v489_v28  ;;  %v1975_v37 = vmin.u32 %v160_v17, %v2979_v26 }
 0x120   :  { %v338_v20 = vsel %vm334_vm5, %v318_v12, %v321_v13  ;;  %v670_v30 = vadd.s32 %v3932_v6, %v3931_v34  ;;  %v692_v47 = vshll.u32 %v691_v1, 23  ;;  %v587_v10 = vadd.s32 127, %v586_v32 }
 0x121   :  { %v3004_v5 = vmul.u32.u64.low %v350_v50, %v345_v25  ;;  %v3005_v57 = vmul.u32.u64.high %v350_v50, %v345_v25, %v3004_v5  ;;  %v491_v8 = vsel %vm408_vm8, %v490_v16, %v489_v28  ;;  %v493_v43 = vsel %vm408_vm8, %v492_v21, %v2850_v53 }
 0x122   :  { %v162_v13 = vclz %v1975_v37  ;;  %v688_v36 = vshrl.u32 %v670_v30, %v686_v58  ;;  %v291_v2 = vadd.s32 3, %v287_v31  ;;  %v494_v42 = vsel %vm2968_vm9, %v3927_v52, %v491_v8 }
 0x123   :  { %v341_v1 = vsel %vm335_vm10, %v338_v20, %v340_v40  ;;  %v687_v32 = vshll.u32 %v2776_v39, %v2905_v3  ;;  %2153 = vcosq.f32 %v494_v42  ;;  %vm359_vm6 = vc.u32 %v2995_v14, %v3004_v5  ;;  %v3933_v20 = vld [vmem:[#allocation3_spill] sm:$0xff] }
 0x124   :  { %v1976_v61 = vadd.s32 4294967294, %v162_v13  ;;  %v2150_v18 = vpop.eup %2149  ;;  %v693_v53 = vor.u32 4788187, %v692_v47  ;;  %v495_v21 = vsel %vm2968_vm9, 0, %v493_v43  ;;  %2155 = vsinq.f32 %v494_v42 }
 0x125   :  { %v360_v38 = vadd.s32 1, %v3005_v57  ;;  %v584_v35 = vshrl.u32 %v2903_v33, %v582_v62  ;;  %v588_v28 = vshll.u32 %v587_v10, 23  ;;  %v357_v39 = vmul.u32 %v350_v50, %v341_v1 }
 0x126   :  { %vm1977_vm13 = vcmp.lt.s32.totalorder %v1976_v61, 0  ;;  %v2152_v3 = vpop.eup %2151  ;;  %v689_v17 = vor.u32 %v688_v36, %v687_v32  ;;  %v292_v12 = vand.u32 3, %v291_v2  ;;  %v499_v31 = vadd.s32 3, %v495_v21 }
 0x127   :  { %v165_v25 = vsel %vm1977_vm13, 0, %v1976_v61  ;;  %v361_v58 = vsel %vm359_vm6, %v360_v38, %v3005_v57  ;;  %v905_v37 = vmul.f32 %v904_v9, %v902_v46  ;;  %v583_v33 = vshll.u32 %v2767_v63, %v2895_v44 }
 0x128   :  { %v166_v4 = vsub.s32 32, %v165_v25  ;;  %v170_v45 = vsub.s32 4294967266, %v165_v25  ;;  %v362_v16 = vadd.s32 %v361_v58, %v357_v39  ;;  %v694_v62 = vand.u32 2147483647, %v693_v53 }
 0x129   :  { %v298_v50 = vxor.u32 2147483648, %v2150_v18  ;;  %vm824_vm14 = vcmp.lt.s32.totalorder %v3933_v20, 0  ;;  %v295_v40 = vxor.u32 2147483648, %v2152_v3  ;;  %v150_v34 = vadd.s32 %v2897_v7, %v2888_v19 }
 0x12a   :  { %v171_v6 = vadd.s32 127, %v170_v45  ;;  %v363_v30 = vadd.s32 536870912, %v362_v16  ;;  %v585_v47 = vor.u32 %v584_v35, %v583_v33  ;;  %v589_v57 = vor.u32 4788187, %v588_v28 }
 0x12b   :  { %v696_v10 = vcvt.s32.f32 %v689_v17  ;;  %vm290_vm15 = vweird.f32 %v2306_v24  ;;  %vm297_vm0 = vcmp.eq.s32.totalorder %v292_v12, 2  ;;  %vm616_vm1 = vcmp.lt.s32.totalorder %v3934_v56, 0 }
 0x12c   :  { %v500_v48 = vand.u32 3, %v499_v31  ;;  %v168_v63 = vshrl.u32 %v150_v34, %v166_v4  ;;  %v172_v44 = vshll.u32 %v171_v6, 23  ;;  %v3040_v46 = vshrl.u32 %v363_v30, 30 }
 0x12d   :  { %v906_v9 = vxor.u32 2147483648, %v905_v37  ;;  %v697_v8 = vmul.f32 %v696_v10, %v694_v62  ;;  %vm294_vm2 = vcmp.eq.s32.totalorder %v292_v12, 0  ;;  %v299_v43 = vsel %vm297_vm0, %v298_v50, %v2152_v3  ;;  %v2154_v19 = vpop.eup %2153 }
 0x12e   :  { %v296_v7 = vsel %vm294_vm2, %v2150_v18, %v295_v40  ;;  %v167_v13 = vshll.u32 %v2979_v26, %v165_v25  ;;  %v173_v36 = vor.u32 4788187, %v172_v44  ;;  %v365_v2 = vshll.u32 %v3040_v46, 30  ;;  %v2156_v42 = vpop.eup %2155 }
 0x12f   :  { %v590_v1 = vand.u32 2147483647, %v589_v57  ;;  %v592_v32 = vcvt.s32.f32 %v585_v47  ;;  %vm293_vm12 = vcmp.lt.s32.totalorder %v292_v12, 2  ;;  %v506_v61 = vxor.u32 2147483648, %v2154_v19 }
 0x130   :  { %v503_v53 = vxor.u32 2147483648, %v2156_v42  ;;  %vm505_vm3 = vcmp.eq.s32.totalorder %v500_v48, 2  ;;  %v169_v21 = vor.u32 %v168_v63, %v167_v13  ;;  %v366_v38 = vsub.s32 %v362_v16, %v365_v2 }
 0x131   :  { %v698_v35 = vxor.u32 2147483648, %v697_v8  ;;  %v300_v28 = vsel %vm293_vm12, %v296_v7, %v299_v43  ;;  %vm502_vm4 = vcmp.eq.s32.totalorder %v500_v48, 0  ;;  %v507_v39 = vsel %vm505_vm3, %v506_v61, %v2156_v42  ;;  %v3948_v42 = vld [vmem:[#allocation10_spill] sm:$0xff] }
 0x132   :  { %vm501_vm5 = vcmp.lt.s32.totalorder %v500_v48, 2  ;;  %v504_v18 = vsel %vm502_vm4, %v2154_v19, %v503_v53  ;;  %v174_v3 = vand.u32 2147483647, %v173_v36  ;;  %v368_v26 = vsub.s32 0, %v366_v38  ;;  %v3944_v48 = vld [vmem:[#allocation6_spill] sm:$0xff] }
 0x133   :  { %v907_v17 = vsel %vm824_vm14, %v906_v9, %v905_v37  ;;  %v593_v25 = vmul.f32 %v592_v32, %v590_v1  ;;  %vm498_vm7 = vweird.f32 %v3927_v52  ;;  %v508_v12 = vsel %vm501_vm5, %v504_v18, %v507_v39 }
 0x134   :  { %v301_v58 = vsel %vm290_vm15, nan, %v300_v28  ;;  %v509_v31 = vsel %vm498_vm7, nan, %v508_v12  ;;  %v176_v4 = vcvt.s32.f32 %v169_v21  ;;  %v1983_v45 = vmin.u32 %v368_v26, %v366_v38 }
 0x135   :  { %v3935_v16 = vand.u32 2147483647, %v2304_v23  ;;  %v699_v62 = vsel %vm616_vm1, %v698_v35, %v697_v8  ;;  %v2059_v37 = vpack.c.bf16 %v509_v31, %v301_v58  ;;  %v3938_v24 = vand.u32 2147483647, %v3933_v20  ;;  %v3952_v31 = vld [vmem:[#allocation7_spill] sm:$0xff] }
 0x136   :  { %v177_v40 = vmul.f32 %v176_v4, %v174_v3  ;;  %v370_v34 = vclz %v1983_v45  ;;  %v594_v30 = vxor.u32 2147483648, %v593_v25  ;;  %v3941_v47 = vand.u32 2147483647, %v3934_v56 }
 0x137   :  { %vm3051_vm8 = vcmp.le.f32.partialorder %v3935_v16, 0.7853982  ;;  %vm3063_vm9 = vcmp.le.f32.partialorder %v3938_v24, 0.7853982  ;;  %2060 = vmatprep.subr.bf16.mxu0 %v2059_v37  ;;  %vm96_vm6 = vcmp.lt.s32.totalorder %v2302_v22, 0  ;;  %vm512_vm13 = vcmp.lt.s32.totalorder %v3944_v48, 0 }
 0x138   :  { %v806_v52 = vsel %vm3051_vm8, %v2304_v23, %v2916_v59  ;;  %v910_v6 = vsel %vm3063_vm9, %v3933_v20, %v907_v17  ;;  %vm3072_vm10 = vcmp.le.f32.partialorder %v3941_v47, 0.7853982  ;;  %v1984_v10 = vadd.s32 4294967294, %v370_v34 }
 0x139   :  { %v702_v59 = vsel %vm3072_vm10, %v3934_v56, %v699_v62  ;;  %2157 = vcosq.f32 %v806_v52  ;;  %v178_v63 = vxor.u32 2147483648, %v177_v40  ;;  %v595_v44 = vsel %vm512_vm13, %v594_v30, %v593_v25 }
 0x13a   :  { %2159 = vcosq.f32 %v910_v6  ;;  %vm1985_vm15 = vcmp.lt.s32.totalorder %v1984_v10, 0  ;;  %v180_v9 = vsub.s32 4, %v2953_v55  ;;  %v358_v43 = vadd.s32 %v3004_v5, %v2995_v14 }
 0x13b   :  { %2161 = vcosq.f32 %v702_v59  ;;  %v373_v8 = vsel %vm1985_vm15, 0, %v1984_v10  ;;  %v700_v13 = vsub.s32 4, %v2740_v49  ;;  %v3945_v36 = vand.u32 2147483647, %v3944_v48 }
 0x13c   :  { %v374_v19 = vsub.s32 32, %v373_v8  ;;  %v378_v7 = vsub.s32 4294967266, %v373_v8  ;;  %2163 = vsinq.f32 %v702_v59  ;;  %v908_v1 = vsub.s32 4, %v3948_v42 }
 0x13d   :  { %vm3089_vm0 = vcmp.le.f32.partialorder %v3945_v36, 0.7853982  ;;  %v179_v32 = vsel %vm96_vm6, %v178_v63, %v177_v40  ;;  %v375_v61 = vshll.u32 %v366_v38, %v373_v8  ;;  %v3895_v14 = vmov 0.0  }
 0x13e   :  { %v376_v53 = vshrl.u32 %v358_v43, %v374_v19  ;;  %v379_v21 = vadd.s32 127, %v378_v7  ;;  %1031 = vmatprep.mubr.f32.mxu0 %v3895_v14  ;;  %2165 = vsinq.f32 %v910_v6  ;;  %v598_v5 = vsel %vm3089_vm0, %v3944_v48, %v595_v44 }
 0x13f   :  { %v3949_v35 = vand.u32 2147483647, %v2302_v22  ;;  %v181_v38 = vsel %vm96_vm6, %v180_v9, %v2953_v55  ;;  %v701_v3 = vsel %vm616_vm1, %v700_v13, %v2740_v49  ;;  %2167 = vsinq.f32 %v806_v52 }
 0x140   :  { %v377_v39 = vor.u32 %v376_v53, %v375_v61  ;;  %v380_v18 = vshll.u32 %v379_v21, 23  ;;  %2169 = vcosq.f32 %v598_v5  ;;  %v909_v25 = vsel %vm824_vm14, %v908_v1, %v3948_v42 }
 0x141   :  { %vm3102_vm2 = vcmp.le.f32.partialorder %v3949_v35, 0.7853982  ;;  %v596_v12 = vsub.s32 4, %v2722_v29  ;;  %2171 = vsinq.f32 %v598_v5  ;;  %v703_v49 = vsel %vm3072_vm10, 0, %v701_v3 }
 0x142   :  { %v182_v26 = vsel %vm3102_vm2, %v2302_v22, %v179_v32  ;;  %v381_v17 = vor.u32 4788187, %v380_v18  ;;  %v183_v58 = vsel %vm3102_vm2, 0, %v181_v38  ;;  %v804_v4 = vsub.s32 4, %v3952_v31 }
 0x143   :  { %v3119_v55 = vpop.eup %2157  ;;  %2173 = vcosq.f32 %v182_v26  ;;  %v384_v62 = vcvt.s32.f32 %v377_v39  ;;  %v388_v52 = vsub.s32 4, %v3040_v46  ;;  %v911_v24 = vsel %vm3063_vm9, 0, %v909_v25 }
 0x144   :  { %v2160_v45 = vpop.eup %2159  ;;  %v382_v16 = vand.u32 2147483647, %v381_v17  ;;  %2175 = vsinq.f32 %v182_v26  ;;  %v187_v40 = vadd.s32 3, %v183_v58  ;;  %v707_v6 = vadd.s32 3, %v703_v49 }
 0x145   :  { %v2162_v37 = vpop.eup %2161  ;;  %v597_v30 = vsel %vm512_vm13, %v596_v12, %v2722_v29  ;;  %v805_v57 = vsel %vm720_vm11, %v804_v4, %v3952_v31  ;;  %vm304_vm14 = vcmp.lt.s32.totalorder %v3924_v15, 0  ;;  %v915_v10 = vadd.s32 3, %v911_v24 }
 0x146   :  { %v385_v34 = vmul.f32 %v384_v62, %v382_v16  ;;  %v2164_v47 = vpop.eup %2163  ;;  %vm3138_vm1 = vcmp.le.f32.partialorder %v302_v51, 0.7853982  ;;  %v389_v44 = vsel %vm304_vm14, %v388_v52, %v3040_v46  ;;  %v599_v29 = vsel %vm3089_vm0, 0, %v597_v30 }
 0x147   :  { %v3145_v9 = vand.u32 3, %v187_v40  ;;  %v708_v43 = vand.u32 3, %v707_v6  ;;  %v807_v19 = vsel %vm3051_vm8, 0, %v805_v57  ;;  %v711_v13 = vxor.u32 2147483648, %v2164_v47 }
 0x148   :  { %v386_v59 = vxor.u32 2147483648, %v385_v34  ;;  %v2166_v63 = vpop.eup %2165  ;;  %v714_v36 = vxor.u32 2147483648, %v2162_v37  ;;  %v391_v46 = vsel %vm3138_vm1, 0, %v389_v44  ;;  %v916_v2 = vand.u32 3, %v915_v10 }
 0x149   :  { %v2168_v7 = vpop.eup %2167  ;;  %v603_v1 = vadd.s32 3, %v599_v29  ;;  %v919_v61 = vxor.u32 2147483648, %v2166_v63  ;;  %v922_v53 = vxor.u32 2147483648, %v2160_v45  ;;  %v811_v33 = vadd.s32 3, %v807_v19 }
 0x14a   :  { %v387_v8 = vsel %vm304_vm14, %v386_v59, %v385_v34  ;;  %v2170_v42 = vpop.eup %2169  ;;  %vm190_vm11 = vcmp.eq.s32.totalorder %v3145_v9, 0  ;;  %vm193_vm12 = vcmp.eq.s32.totalorder %v3145_v9, 2  ;;  %vm710_vm3 = vcmp.eq.s32.totalorder %v708_v43, 0 }
 0x14b   :  { %v390_v51 = vsel %vm3138_vm1, %v3924_v15, %v387_v8  ;;  %v2172_v32 = vpop.eup %2171  ;;  %vm713_vm4 = vcmp.eq.s32.totalorder %v708_v43, 2  ;;  %v395_v35 = vadd.s32 3, %v391_v46  ;;  %vm706_vm5 = vweird.f32 %v3934_v56 }
 0x14c   :  { %2177 = vcosq.f32 %v390_v51  ;;  %v712_v28 = vsel %vm710_vm3, %v2162_v37, %v711_v13  ;;  %v715_v38 = vsel %vm713_vm4, %v714_v36, %v2164_v47  ;;  %vm189_vm7 = vcmp.lt.s32.totalorder %v3145_v9, 2  ;;  %v937_v13 = vpop.permute.xlu0 %936 }
 0x14d   :  { %2179 = vsinq.f32 %v390_v51  ;;  %v2174_v21 = vpop.eup %2173  ;;  %vm918_vm8 = vcmp.eq.s32.totalorder %v916_v2, 0  ;;  %vm921_vm9 = vcmp.eq.s32.totalorder %v916_v2, 2  ;;  %v604_v39 = vand.u32 3, %v603_v1 }
 0x14e   :  { %v2176_v5 = vpop.eup %2175  ;;  %v607_v18 = vxor.u32 2147483648, %v2172_v32  ;;  %v920_v3 = vsel %vm918_vm8, %v2160_v45, %v919_v61  ;;  %v923_v26 = vsel %vm921_vm9, %v922_v53, %v2166_v63  ;;  %v610_v17 = vxor.u32 2147483648, %v2170_v42  ;;  %v942_v61 = vpop.permute.xlu1 %941 }
 0x14f   :  { %v812_v25 = vand.u32 3, %v811_v33  ;;  %v191_v12 = vxor.u32 2147483648, %v2176_v5  ;;  %v194_v58 = vxor.u32 2147483648, %v2174_v21  ;;  %v815_v49 = vxor.u32 2147483648, %v2168_v7 }
 0x150   :  { %v818_v31 = vxor.u32 2147483648, %v3119_v55  ;;  %v396_v4 = vand.u32 3, %v395_v35  ;;  %vm709_vm10 = vcmp.lt.s32.totalorder %v708_v43, 2  ;;  %vm914_vm6 = vweird.f32 %v3933_v20 }
 0x151   :  { %vm917_vm13 = vcmp.lt.s32.totalorder %v916_v2, 2  ;;  %v716_v16 = vsel %vm709_vm10, %v712_v28, %v715_v38  ;;  %vm606_vm15 = vcmp.eq.s32.totalorder %v604_v39, 0  ;;  %vm609_vm0 = vcmp.eq.s32.totalorder %v604_v39, 2 }
 0x152   :  { %v924_v62 = vsel %vm917_vm13, %v920_v3, %v923_v26  ;;  %v608_v37 = vsel %vm606_vm15, %v2170_v42, %v607_v18  ;;  %v611_v52 = vsel %vm609_vm0, %v610_v17, %v2172_v32  ;;  %vm814_vm2 = vcmp.eq.s32.totalorder %v812_v25, 0 }
 0x153   :  { %vm817_vm14 = vcmp.eq.s32.totalorder %v812_v25, 2  ;;  %v192_v24 = vsel %vm190_vm11, %v2174_v21, %v191_v12  ;;  %v195_v40 = vsel %vm193_vm12, %v194_v58, %v2176_v5  ;;  %v816_v34 = vsel %vm814_vm2, %v3119_v55, %v815_v49 }
 0x154   :  { %v819_v6 = vsel %vm817_vm14, %v818_v31, %v2168_v7  ;;  %vm398_vm1 = vcmp.eq.s32.totalorder %v396_v4, 0  ;;  %vm401_vm3 = vcmp.eq.s32.totalorder %v396_v4, 2  ;;  %v717_v57 = vsel %vm706_vm5, nan, %v716_v16 }
 0x155   :  { %v925_v10 = vsel %vm914_vm6, nan, %v924_v62  ;;  %vm605_vm4 = vcmp.lt.s32.totalorder %v604_v39, 2  ;;  %vm813_vm8 = vcmp.lt.s32.totalorder %v812_v25, 2  ;;  %v196_v63 = vsel %vm189_vm7, %v192_v24, %v195_v40 }
 0x156   :  { %v2178_v45 = vpop.eup %2177  ;;  %v612_v44 = vsel %vm605_vm4, %v608_v37, %v611_v52  ;;  %v820_v55 = vsel %vm813_vm8, %v816_v34, %v819_v6  ;;  %vm186_vm11 = vweird.f32 %v2302_v22  ;;  %vm394_vm12 = vweird.f32 %v3924_v15  ;;  %v926_v22 = vld [vmem:[%s3852_s4] sm:$0xff]  ;;  %v928_v15 = vld [vmem:[%s3852_s4 + $0x10] sm:$0xff] }
 0x157   :  { %v2180_v30 = vpop.eup %2179  ;;  %v402_v47 = vxor.u32 2147483648, %v2178_v45  ;;  %vm397_vm9 = vcmp.lt.s32.totalorder %v396_v4, 2  ;;  %v2063_v8 = vpack.c.bf16 %v925_v10, %v717_v57  ;;  %vm602_vm5 = vweird.f32 %v3944_v48  ;;  %v929_v48 = vld [vmem:[%s3852_s4 + $0x18] sm:$0xff] }
 0x158   :  { %v399_v59 = vxor.u32 2147483648, %v2180_v30  ;;  %vm810_vm10 = vweird.f32 %v2304_v23  ;;  %v197_v20 = vsel %vm186_vm11, nan, %v196_v63  ;;  %v613_v19 = vsel %vm602_vm5, nan, %v612_v44  ;;  %v927_v23 = vld [vmem:[%s3852_s4 + $0x8] sm:$0xff] }
 0x159   :  { %v403_v50 = vsel %vm401_vm3, %v402_v47, %v2180_v30  ;;  %v821_v9 = vsel %vm810_vm10, nan, %v820_v55  ;;  %vm954_vm7 = vcmask 261120  }
 0x15a   :  { %v400_v29 = vsel %vm398_vm1, %v2178_v45, %v399_v59  ;;  %v2065_v51 = vpack.c.bf16 %v821_v9, %v613_v19 }
 0x15b   :  { %v404_v56 = vsel %vm397_vm9, %v400_v29, %v403_v50 }
 0x15c   :  { %v405_v43 = vsel %vm394_vm12, nan, %v404_v56 }
 0x15d   :  { %v2061_v7 = vpack.c.bf16 %v405_v43, %v197_v20 }
 0x15f   :  { %2062 = vmatpush1.bf16.msra.mxu0 %v2061_v7 }
 0x160   :  { %2064 = vmatprep.subr.bf16.mxu0 %v2063_v8 }
 0x163   :  { %2066 = vmatpush1.bf16.msra.mxu0 %v2065_v51 }
 0x166   :  { %2006 = vmatmul.mubr.msk.f32.vlgmr.msra.gmra.mrb[0].mxu0 %vm954_vm7, %v926_v22 }
 0x167   :  { %1037 = vmatprep.mubr.f32.mxu0 %v3895_v14 }
 0x16a   :  { %2007 = vmatmul.mubr.msk.f32.gmra.mrb[2].mxu0 %vm954_vm7, %v927_v23 }
 0x16b   :  { %1043 = vmatprep.mubr.f32.mxu0 %v3895_v14 }
 0x16e   :  { %2008 = vmatmul.mubr.msk.f32.gmra.mrb[4].mxu0 %vm954_vm7, %v928_v15 }
 0x16f   :  { %1049 = vmatprep.mubr.f32.mxu0 %v3895_v14 }
 0x172   :  { %2009 = vmatmul.mubr.msk.f32.gmra.mrb[6].mxu0 %vm954_vm7, %v929_v48 }
 0x239   :  { %v1033_v36 = vpop.f32.mrb[0].mxu0 }
 0x23a   :  { %v3194_v42 = vadd.f32 %v1033_v36, %v937_v13  ;;  %v1035_v46 = vpop.f32.mrb[1].mxu0 }
 0x23b   :  { %v3196_v2 = vadd.f32 %v1035_v46, %v937_v13 }
 0x23c   :  { %v1056_v1 = vand.u32 2147483647, %v3194_v42  ;;  %v1059_v32 = vand.u32 2139095040, %v3194_v42 }
 0x23d   :  { %v1160_v53 = vand.u32 2147483647, %v3196_v2  ;;  %v1163_v33 = vand.u32 2139095040, %v3196_v2  ;;  %v1039_v21 = vpop.f32.mrb[2].mxu0 }
 0x23e   :  { %v1060_v5 = vshrl.u32 %v1059_v32, 23  ;;  %v1063_v35 = vand.u32 8388607, %v1056_v1  ;;  %v3204_v28 = vadd.f32 %v1039_v21, %v942_v61  ;;  %v1041_v38 = vpop.f32.mrb[3].mxu0 }
 0x23f   :  { %v1164_v39 = vshrl.u32 %v1163_v33, 23  ;;  %v1167_v18 = vand.u32 8388607, %v1160_v53  ;;  %v3218_v24 = vadd.f32 %v1041_v38, %v942_v61 }
 0x240   :  { %v2010_v3 = vadd.s32 4294967169, %v1060_v5  ;;  %v1264_v26 = vand.u32 2147483647, %v3204_v28  ;;  %v1267_v25 = vand.u32 2139095040, %v3204_v28  ;;  %v1064_v58 = vor.u32 8388608, %v1063_v35 }
 0x241   :  { %v2014_v17 = vadd.s32 4294967169, %v1164_v39  ;;  %v3210_v12 = vpop.f32.mrb[4].mxu0  ;;  %v1168_v31 = vor.u32 8388608, %v1167_v18 }
 0x242   :  { %v1066_v49 = vadd.s32 1, %v2010_v3  ;;  %v1268_v16 = vshrl.u32 %v1267_v25, 23  ;;  %v3214_v62 = vand.u32 8388607, %v1264_v26  ;;  %v3216_v37 = vpop.f32.mrb[5].mxu0  ;;  %v3222_v30 = vshll.u32 %v1064_v58, 8 }
 0x243   :  { %v1170_v4 = vadd.s32 1, %v2014_v17  ;;  %v3228_v63 = vshll.u32 %v1168_v31, 8 }
 0x244   :  { %vm1067_vm6 = vcmp.gt.s32.totalorder %v1066_v49, 0  ;;  %v2018_v45 = vadd.s32 4294967169, %v1268_v16  ;;  %v1272_v50 = vor.u32 8388608, %v3214_v62 }
 0x245   :  { %v1068_v52 = vsel %vm1067_vm6, %v1066_v49, 0  ;;  %vm1171_vm13 = vcmp.gt.s32.totalorder %v1170_v4, 0  ;;  %v3220_v40 = vpop.f32.mrb[6].mxu0 }
 0x246   :  { %v1069_v34 = vshrl.u32 %v1068_v52, 5  ;;  %v1070_v6 = vand.u32 31, %v1068_v52  ;;  %v1172_v47 = vsel %vm1171_vm13, %v1170_v4, 0  ;;  %v3224_v57 = vpop.f32.mrb[7].mxu0  ;;  %v3233_v56 = vadd.s32 1, %v2018_v45 }
 0x247   :  { %v3226_v59 = vshrl.u32 %v1172_v47, 5  ;;  %v1174_v10 = vand.u32 31, %v1172_v47 }
 0x248   :  { %v1071_v44 = vsub.s32 32, %v1070_v6  ;;  %v1073_v55 = vshll.u32 %v3913_v0, %v1070_v6  ;;  %v1076_v29 = vshll.u32 %v3912_v54, %v1070_v6  ;;  %v1079_v8 = vshll.u32 %v3915_v41, %v1070_v6 }
 0x249   :  { %v1082_v20 = vshll.u32 %v3917_v11, %v1070_v6  ;;  %v1085_v43 = vshll.u32 %v3910_v60, %v1070_v6  ;;  %vm1088_vm15 = vcmp.lt.s32.totalorder %v1069_v34, 1  ;;  %vm1089_vm0 = vcmp.lt.s32.totalorder %v1069_v34, 2 }
 0x24a   :  { %v1074_v19 = vshrl.u32 %v3912_v54, %v1071_v44  ;;  %v1077_v9 = vshrl.u32 %v3915_v41, %v1071_v44  ;;  %v1080_v7 = vshrl.u32 %v3917_v11, %v1071_v44  ;;  %v1072_v51 = vshrl.u32 %v3913_v0, %v1071_v44 }
 0x24b   :  { %v1083_v22 = vshrl.u32 %v3910_v60, %v1071_v44  ;;  %v1086_v23 = vshrl.u32 %v3911_v27, %v1071_v44  ;;  %vm1090_vm2 = vcmp.lt.s32.totalorder %v1069_v34, 3  ;;  %v1175_v36 = vsub.s32 32, %v1174_v10 }
 0x24c   :  { %v1075_v15 = vor.u32 %v1074_v19, %v1073_v55  ;;  %v1078_v48 = vor.u32 %v1077_v9, %v1076_v29  ;;  %v1081_v13 = vor.u32 %v1080_v7, %v1079_v8  ;;  %vm1091_vm14 = vcmp.lt.s32.totalorder %v1069_v34, 4 }
 0x24d   :  { %v1084_v46 = vor.u32 %v1083_v22, %v1082_v20  ;;  %v1087_v32 = vor.u32 %v1086_v23, %v1085_v43  ;;  %v1177_v61 = vshll.u32 %v3913_v0, %v1174_v10  ;;  %v1180_v3 = vshll.u32 %v3912_v54, %v1174_v10 }
 0x24e   :  { %v1092_v33 = vsel %vm1088_vm15, %v1072_v51, %v1075_v15  ;;  %v1093_v21 = vsel %vm1091_vm14, %v1081_v13, 2102212464  ;;  %v1096_v5 = vsel %vm1088_vm15, %v1075_v15, %v1078_v48  ;;  %v1100_v35 = vsel %vm1088_vm15, %v1078_v48, %v1081_v13 }
 0x24f   :  { %v1094_v38 = vsel %vm1090_vm2, %v1078_v48, %v1093_v21  ;;  %v1097_v39 = vsel %vm1091_vm14, %v1084_v46, 920167782  ;;  %v1101_v18 = vsel %vm1091_vm14, %v1087_v32, 1326507024  ;;  %v1176_v58 = vshrl.u32 %v3913_v0, %v1175_v36 }
 0x250   :  { %v1098_v17 = vsel %vm1090_vm2, %v1081_v13, %v1097_v39  ;;  %v1102_v25 = vsel %vm1090_vm2, %v1084_v46, %v1101_v18  ;;  %v1178_v49 = vshrl.u32 %v3912_v54, %v1175_v36  ;;  %v1095_v31 = vsel %vm1089_vm0, %v1092_v33, %v1094_v38 }
 0x251   :  { %v1099_v4 = vsel %vm1089_vm0, %v1096_v5, %v1098_v17  ;;  %v1103_v16 = vsel %vm1089_vm0, %v1100_v35, %v1102_v25  ;;  %v1181_v52 = vshrl.u32 %v3915_v41, %v1175_v36  ;;  %v1183_v8 = vshll.u32 %v3915_v41, %v1174_v10 }
 0x252   :  { %v3259_v45 = vmul.u32.u64.low %v3222_v30, %v1103_v16  ;;  %v3260_v6 = vmul.u32.u64.high %v3222_v30, %v1103_v16, %v3259_v45  ;;  %v3263_v47 = vmul.u32.u64.low %v3222_v30, %v1099_v4  ;;  %v3264_v44 = vmul.u32.u64.high %v3222_v30, %v1099_v4, %v3263_v47 }
 0x253   :  { %v1179_v55 = vor.u32 %v1178_v49, %v1177_v61  ;;  %v1182_v29 = vor.u32 %v1181_v52, %v1180_v3  ;;  %v1184_v20 = vshrl.u32 %v3917_v11, %v1175_v36  ;;  %v1111_v43 = vmul.u32 %v3222_v30, %v1095_v31 }
 0x254   :  { %v1186_v34 = vshll.u32 %v3917_v11, %v1174_v10  ;;  %v1187_v19 = vshrl.u32 %v3910_v60, %v1175_v36  ;;  %v1190_v9 = vshrl.u32 %v3911_v27, %v1175_v36  ;;  %v1189_v51 = vshll.u32 %v3910_v60, %v1174_v10 }
 0x255   :  { %v1185_v7 = vor.u32 %v1184_v20, %v1183_v8  ;;  %vm1192_vm1 = vcmp.lt.s32.totalorder %v3226_v59, 1  ;;  %vm1193_vm3 = vcmp.lt.s32.totalorder %v3226_v59, 2  ;;  %vm1113_vm4 = vc.u32 %v3260_v6, %v3263_v47 }
 0x256   :  { %v1114_v22 = vadd.s32 1, %v3264_v44  ;;  %v1188_v23 = vor.u32 %v1187_v19, %v1186_v34  ;;  %vm1194_vm8 = vcmp.lt.s32.totalorder %v3226_v59, 3  ;;  %v1191_v30 = vor.u32 %v1190_v9, %v1189_v51 }
 0x257   :  { %vm1195_vm11 = vcmp.lt.s32.totalorder %v3226_v59, 4  ;;  %v1196_v15 = vsel %vm1192_vm1, %v1176_v58, %v1179_v55  ;;  %v1200_v48 = vsel %vm1192_vm1, %v1179_v55, %v1182_v29  ;;  %v1204_v46 = vsel %vm1192_vm1, %v1182_v29, %v1185_v7 }
 0x258   :  { %v1115_v13 = vsel %vm1113_vm4, %v1114_v22, %v3264_v44  ;;  %v1197_v36 = vsel %vm1195_vm11, %v1185_v7, 2102212464  ;;  %v1201_v10 = vsel %vm1195_vm11, %v1188_v23, 920167782  ;;  %v1205_v21 = vsel %vm1195_vm11, %v1191_v30, 1326507024 }
 0x259   :  { %v1116_v32 = vadd.s32 %v1115_v13, %v1111_v43  ;;  %v1198_v61 = vsel %vm1194_vm8, %v1182_v29, %v1197_v36  ;;  %v1202_v33 = vsel %vm1194_vm8, %v1185_v7, %v1201_v10  ;;  %v1206_v35 = vsel %vm1194_vm8, %v1188_v23, %v1205_v21 }
 0x25a   :  { %v1203_v5 = vsel %vm1193_vm3, %v1200_v48, %v1202_v33  ;;  %vm1275_vm12 = vcmp.gt.s32.totalorder %v3233_v56, 0  ;;  %v1371_v38 = vand.u32 2139095040, %v3218_v24  ;;  %v1207_v18 = vsel %vm1193_vm3, %v1204_v46, %v1206_v35 }
 0x25b   :  { %v1117_v39 = vadd.s32 536870912, %v1116_v32  ;;  %v3287_v3 = vmul.u32.u64.low %v3228_v63, %v1203_v5  ;;  %v3288_v17 = vmul.u32.u64.high %v3228_v63, %v1203_v5, %v3287_v3  ;;  %v1199_v25 = vsel %vm1193_vm3, %v1196_v15, %v1198_v61 }
 0x25c   :  { %v3294_v58 = vmul.u32.u64.low %v3228_v63, %v1207_v18  ;;  %v3295_v49 = vmul.u32.u64.high %v3228_v63, %v1207_v18, %v3294_v58  ;;  %v1276_v31 = vsel %vm1275_vm12, %v3233_v56, 0  ;;  %v3301_v52 = vadd.s32 %v3263_v47, %v3260_v6 }
 0x25d   :  { %v3298_v4 = vshrl.u32 %v1117_v39, 30  ;;  %v1278_v16 = vand.u32 31, %v1276_v31  ;;  %v3305_v45 = vshll.u32 %v1272_v50, 8  ;;  %v1368_v44 = vand.u32 2147483647, %v3218_v24 }
 0x25e   :  { %v1372_v59 = vshrl.u32 %v1371_v38, 23  ;;  %v1215_v29 = vmul.u32 %v3228_v63, %v1199_v25  ;;  %v1218_v8 = vadd.s32 1, %v3288_v17  ;;  %vm1217_vm9 = vc.u32 %v3295_v49, %v3287_v3 }
 0x25f   :  { %v1119_v55 = vshll.u32 %v3298_v4, 30  ;;  %v1279_v56 = vsub.s32 32, %v1278_v16  ;;  %v1277_v20 = vshrl.u32 %v1276_v31, 5  ;;  %v1281_v6 = vshll.u32 %v3913_v0, %v1278_v16 }
 0x260   :  { %v1284_v62 = vshll.u32 %v3912_v54, %v1278_v16  ;;  %v1219_v47 = vsel %vm1217_vm9, %v1218_v8, %v3288_v17  ;;  %v1287_v34 = vshll.u32 %v3915_v41, %v1278_v16  ;;  %v1290_v7 = vshll.u32 %v3917_v11, %v1278_v16 }
 0x261   :  { %v3315_v50 = vsub.s32 %v1116_v32, %v1119_v55  ;;  %v1282_v43 = vshrl.u32 %v3912_v54, %v1279_v56  ;;  %v1220_v63 = vadd.s32 %v1219_v47, %v1215_v29  ;;  %v1285_v19 = vshrl.u32 %v3915_v41, %v1279_v56 }
 0x262   :  { %v1288_v9 = vshrl.u32 %v3917_v11, %v1279_v56  ;;  %v1291_v23 = vshrl.u32 %v3910_v60, %v1279_v56  ;;  %v1293_v30 = vshll.u32 %v3910_v60, %v1278_v16  ;;  %v1294_v36 = vshrl.u32 %v3911_v27, %v1279_v56 }
 0x263   :  { %v1122_v51 = vsub.s32 0, %v3315_v50  ;;  %v1283_v22 = vor.u32 %v1282_v43, %v1281_v6  ;;  %v1221_v15 = vadd.s32 536870912, %v1220_v63  ;;  %v1286_v48 = vor.u32 %v1285_v19, %v1284_v62 }
 0x264   :  { %v1289_v13 = vor.u32 %v1288_v9, %v1287_v34  ;;  %v1280_v46 = vshrl.u32 %v3913_v0, %v1279_v56  ;;  %v1292_v32 = vor.u32 %v1291_v23, %v1290_v7  ;;  %v2022_v61 = vadd.s32 4294967169, %v1372_v59 }
 0x265   :  { %v2011_v10 = vmin.u32 %v1122_v51, %v3315_v50  ;;  %v3329_v33 = vshrl.u32 %v1221_v15, 30  ;;  %v1295_v21 = vor.u32 %v1294_v36, %v1293_v30  ;;  %vm1296_vm5 = vcmp.lt.s32.totalorder %v1277_v20, 1 }
 0x266   :  { %vm1299_vm10 = vcmp.lt.s32.totalorder %v1277_v20, 4  ;;  %vm1297_vm6 = vcmp.lt.s32.totalorder %v1277_v20, 2  ;;  %v1304_v38 = vsel %vm1296_vm5, %v1283_v22, %v1286_v48  ;;  %vm1298_vm13 = vcmp.lt.s32.totalorder %v1277_v20, 3 }
 0x267   :  { %v1124_v5 = vclz %v2011_v10  ;;  %v1301_v35 = vsel %vm1299_vm10, %v1289_v13, 2102212464  ;;  %v1223_v39 = vshll.u32 %v3329_v33, 30  ;;  %v1305_v18 = vsel %vm1299_vm10, %v1292_v32, 920167782 }
 0x268   :  { %v1308_v17 = vsel %vm1296_vm5, %v1286_v48, %v1289_v13  ;;  %v1300_v58 = vsel %vm1296_vm5, %v1280_v46, %v1283_v22  ;;  %v1306_v31 = vsel %vm1298_vm13, %v1289_v13, %v1305_v18  ;;  %v1309_v16 = vsel %vm1299_vm10, %v1295_v21, 1326507024 }
 0x269   :  { %v2012_v25 = vadd.s32 4294967294, %v1124_v5  ;;  %v3332_v55 = vsub.s32 %v1220_v63, %v1223_v39  ;;  %v1302_v59 = vsel %vm1298_vm13, %v1286_v48, %v1301_v35  ;;  %v1307_v29 = vsel %vm1297_vm6, %v1304_v38, %v1306_v31  ;;  %v3358_v38 = vpop.permute.xlu0 %946 }
 0x26a   :  { %v1310_v8 = vsel %vm1298_vm13, %v1292_v32, %v1309_v16  ;;  %v3337_v6 = vmul.u32.u64.low %v3305_v45, %v1307_v29  ;;  %v3338_v62 = vmul.u32.u64.high %v3305_v45, %v1307_v29, %v3337_v6  ;;  %v1303_v7 = vsel %vm1297_vm6, %v1300_v58, %v1302_v59 }
 0x26b   :  { %vm2013_vm15 = vcmp.lt.s32.totalorder %v2012_v25, 0  ;;  %v1311_v56 = vsel %vm1297_vm6, %v1308_v17, %v1310_v8  ;;  %v1226_v43 = vsub.s32 0, %v3332_v55  ;;  %v1378_v51 = vadd.s32 1, %v2022_v61 }
 0x26c   :  { %v1127_v47 = vsel %vm2013_vm15, 0, %v2012_v25  ;;  %v3343_v34 = vmul.u32.u64.low %v3305_v45, %v1311_v56  ;;  %v3344_v19 = vmul.u32.u64.high %v3305_v45, %v1311_v56, %v3343_v34  ;;  %v1375_v30 = vand.u32 8388607, %v1368_v44 }
 0x26d   :  { %v1128_v63 = vsub.s32 32, %v1127_v47  ;;  %v1132_v9 = vsub.s32 4294967266, %v1127_v47  ;;  %v1129_v22 = vshll.u32 %v3315_v50, %v1127_v47  ;;  %v2015_v23 = vmin.u32 %v1226_v43, %v3332_v55 }
 0x26e   :  { %v1322_v13 = vadd.s32 1, %v3338_v62  ;;  %vm1379_vm0 = vcmp.gt.s32.totalorder %v1378_v51, 0  ;;  %v1319_v10 = vmul.u32 %v3305_v45, %v1303_v7  ;;  %vm1321_vm2 = vc.u32 %v3344_v19, %v3337_v6 }
 0x26f   :  { %v1130_v15 = vshrl.u32 %v3301_v52, %v1128_v63  ;;  %v1133_v48 = vadd.s32 127, %v1132_v9  ;;  %v1228_v36 = vclz %v2015_v23  ;;  %v1380_v20 = vsel %vm1379_vm0, %v1378_v51, 0 }
 0x270   :  { %v1323_v32 = vsel %vm1321_vm2, %v1322_v13, %v3338_v62  ;;  %v1376_v5 = vor.u32 8388608, %v1375_v30  ;;  %v1382_v35 = vand.u32 31, %v1380_v20  ;;  %vm1058_vm14 = vcmp.lt.s32.totalorder %v3194_v42, 0 }
 0x271   :  { %v1131_v46 = vor.u32 %v1130_v15, %v1129_v22  ;;  %v1134_v50 = vshll.u32 %v1133_v48, 23  ;;  %v2016_v61 = vadd.s32 4294967294, %v1228_v36  ;;  %v1324_v21 = vadd.s32 %v1323_v32, %v1319_v10 }
 0x272   :  { %vm3362_vm1 = vcmp.le.f32.partialorder %v1056_v1, 0.7853982  ;;  %v1383_v18 = vsub.s32 32, %v1382_v35  ;;  %v3368_v31 = vadd.f32 %v3210_v12, %v3358_v38  ;;  %v1216_v16 = vadd.s32 %v3287_v3, %v3295_v49 }
 0x273   :  { %v1135_v52 = vor.u32 4788187, %v1134_v50  ;;  %vm2017_vm3 = vcmp.lt.s32.totalorder %v2016_v61, 0  ;;  %v1325_v39 = vadd.s32 536870912, %v1324_v21  ;;  %v1138_v25 = vcvt.s32.f32 %v1131_v46 }
 0x274   :  { %v1231_v58 = vsel %vm2017_vm3, 0, %v2016_v61  ;;  %v3374_v1 = vshll.u32 %v1376_v5, 8  ;;  %v1385_v56 = vshll.u32 %v3913_v0, %v1382_v35  ;;  %v1386_v62 = vshrl.u32 %v3912_v54, %v1383_v18 }
 0x275   :  { %v1136_v17 = vand.u32 2147483647, %v1135_v52  ;;  %v1236_v59 = vsub.s32 4294967266, %v1231_v58  ;;  %v3372_v29 = vshrl.u32 %v1325_v39, 30  ;;  %v1389_v47 = vshrl.u32 %v3915_v41, %v1383_v18 }
 0x276   :  { %v1388_v12 = vshll.u32 %v3912_v54, %v1382_v35  ;;  %v1391_v34 = vshll.u32 %v3915_v41, %v1382_v35  ;;  %v1392_v3 = vshrl.u32 %v3917_v11, %v1383_v18  ;;  %v1381_v9 = vshrl.u32 %v1380_v20, 5 }
 0x277   :  { %v1139_v8 = vmul.f32 %v1138_v25, %v1136_v17  ;;  %v1327_v43 = vshll.u32 %v3372_v29, 30  ;;  %v1237_v63 = vadd.s32 127, %v1236_v59  ;;  %v1387_v7 = vor.u32 %v1386_v62, %v1385_v56 }
 0x278   :  { %v1390_v22 = vor.u32 %v1389_v47, %v1388_v12  ;;  %v1393_v23 = vor.u32 %v1392_v3, %v1391_v34  ;;  %v1394_v30 = vshll.u32 %v3917_v11, %v1382_v35  ;;  %v1395_v48 = vshrl.u32 %v3910_v60, %v1383_v18 }
 0x279   :  { %v1140_v49 = vxor.u32 2147483648, %v1139_v8  ;;  %v3383_v51 = vsub.s32 %v1324_v21, %v1327_v43  ;;  %v1397_v13 = vshll.u32 %v3910_v60, %v1382_v35  ;;  %v1398_v36 = vshrl.u32 %v3911_v27, %v1383_v18 }
 0x27a   :  { %v1232_v20 = vsub.s32 32, %v1231_v58  ;;  %v3899_v50 = vand.u32 2147483647, %v3368_v31  ;;  %v1238_v32 = vshll.u32 %v1237_v63, 23  ;;  %v1396_v61 = vor.u32 %v1395_v48, %v1394_v30 }
 0x27b   :  { %v1141_v15 = vsel %vm1058_vm14, %v1140_v49, %v1139_v8  ;;  %v1330_v46 = vsub.s32 0, %v3383_v51  ;;  %v1399_v21 = vor.u32 %v1398_v36, %v1397_v13  ;;  %vm1400_vm4 = vcmp.lt.s32.totalorder %v1381_v9, 1 }
 0x27c   :  { %v3394_v10 = vsel %vm3362_vm1, %v3194_v42, %v1141_v15  ;;  %v1233_v5 = vshll.u32 %v3332_v55, %v1231_v58  ;;  %vm1401_vm8 = vcmp.lt.s32.totalorder %v1381_v9, 2  ;;  %vm1403_vm11 = vcmp.lt.s32.totalorder %v1381_v9, 4 }
 0x27d   :  { %v2019_v35 = vmin.u32 %v1330_v46, %v3383_v51  ;;  %vm1402_vm12 = vcmp.lt.s32.totalorder %v1381_v9, 3  ;;  %v1405_v52 = vsel %vm1403_vm11, %v1393_v23, 2102212464  ;;  %v1408_v39 = vsel %vm1400_vm4, %v1387_v7, %v1390_v22 }
 0x27e   :  { %v1409_v17 = vsel %vm1403_vm11, %v1396_v61, 920167782  ;;  %v1234_v25 = vshrl.u32 %v1216_v16, %v1232_v20  ;;  %v1384_v8 = vshrl.u32 %v3913_v0, %v1383_v18  ;;  %v1239_v62 = vor.u32 4788187, %v1238_v32 }
 0x27f   :  { %v1332_v59 = vclz %v2019_v35  ;;  %v1410_v56 = vsel %vm1402_vm12, %v1393_v23, %v1409_v17  ;;  %v1412_v43 = vsel %vm1400_vm4, %v1390_v22, %v1393_v23  ;;  %v1413_v55 = vsel %vm1403_vm11, %v1399_v21, 1326507024 }
 0x280   :  { %v1411_v47 = vsel %vm1401_vm8, %v1408_v39, %v1410_v56  ;;  %v1404_v12 = vsel %vm1400_vm4, %v1384_v8, %v1387_v7  ;;  %v1406_v34 = vsel %vm1402_vm12, %v1390_v22, %v1405_v52  ;;  %v1414_v3 = vsel %vm1402_vm12, %v1396_v61, %v1413_v55 }
 0x281   :  { %v2020_v58 = vadd.s32 4294967294, %v1332_v59  ;;  %v1415_v49 = vsel %vm1401_vm8, %v1412_v43, %v1414_v3  ;;  %v3407_v63 = vmul.u32.u64.low %v3374_v1, %v1411_v47  ;;  %v3408_v16 = vmul.u32.u64.high %v3374_v1, %v1411_v47, %v3407_v63 }
 0x282   :  { %v1475_v18 = vand.u32 2139095040, %v3368_v31  ;;  %v1235_v30 = vor.u32 %v1234_v25, %v1233_v5  ;;  %v3413_v15 = vmul.u32.u64.low %v3374_v1, %v1415_v49  ;;  %v3414_v23 = vmul.u32.u64.high %v3374_v1, %v1415_v49, %v3413_v15 }
 0x283   :  { %vm2021_vm9 = vcmp.lt.s32.totalorder %v2020_v58, 0  ;;  %v1407_v7 = vsel %vm1401_vm8, %v1404_v12, %v1406_v34  ;;  %v1240_v13 = vand.u32 2147483647, %v1239_v62  ;;  %v1426_v20 = vadd.s32 1, %v3408_v16 }
 0x284   :  { %v1335_v48 = vsel %vm2021_vm9, 0, %v2020_v58  ;;  %v1476_v22 = vshrl.u32 %v1475_v18, 23  ;;  %v1479_v32 = vand.u32 8388607, %v3899_v50  ;;  %v1242_v61 = vcvt.s32.f32 %v1235_v30 }
 0x285   :  { %v1340_v36 = vsub.s32 4294967266, %v1335_v48  ;;  %v1423_v21 = vmul.u32 %v3374_v1, %v1407_v7  ;;  %vm1425_vm5 = vc.u32 %v3414_v23, %v3407_v63  ;;  %v1336_v52 = vsub.s32 32, %v1335_v48 }
 0x286   :  { %v2026_v46 = vadd.s32 4294967169, %v1476_v22  ;;  %v1427_v5 = vsel %vm1425_vm5, %v1426_v20, %v3408_v16  ;;  %v3424_v9 = vmul.f32 %v1242_v61, %v1240_v13  ;;  %v1480_v25 = vor.u32 8388608, %v1479_v32 }
 0x287   :  { %v1428_v39 = vadd.s32 %v1427_v5, %v1423_v21  ;;  %v1341_v17 = vadd.s32 127, %v1340_v36  ;;  %v3428_v59 = vadd.f32 %v3216_v37, %v3358_v38  ;;  %v1320_v1 = vadd.s32 %v3337_v6, %v3344_v19 }
 0x288   :  { %v1482_v35 = vadd.s32 1, %v2026_v46  ;;  %v1244_v47 = vxor.u32 2147483648, %v3424_v9  ;;  %v1337_v43 = vshll.u32 %v3383_v51, %v1335_v48  ;;  %v3436_v3 = vshll.u32 %v1480_v25, 8 }
 0x289   :  { %v1429_v8 = vadd.s32 536870912, %v1428_v39  ;;  %v1338_v55 = vshrl.u32 %v1320_v1, %v1336_v52  ;;  %v1342_v12 = vshll.u32 %v1341_v17, 23  ;;  %v1579_v37 = vand.u32 2139095040, %v3428_v59 }
 0x28a   :  { %vm1483_vm10 = vcmp.gt.s32.totalorder %v1482_v35, 0  ;;  %v3898_v5 = vand.u32 2147483647, %v3428_v59  ;;  %vm1162_vm6 = vcmp.lt.s32.totalorder %v3196_v2, 0  ;;  %vm3475_vm3 = vcmp.le.f32.partialorder %v1160_v53, 0.7853982 }
 0x28b   :  { %v1484_v56 = vsel %vm1483_vm10, %v1482_v35, 0  ;;  %v3434_v58 = vshrl.u32 %v1429_v8, 30  ;;  %v1339_v32 = vor.u32 %v1338_v55, %v1337_v43  ;;  %v1343_v35 = vor.u32 4788187, %v1342_v12 }
 0x28c   :  { %v1486_v62 = vand.u32 31, %v1484_v56  ;;  %v1485_v49 = vshrl.u32 %v1484_v56, 5  ;;  %v1245_v53 = vsel %vm1162_vm6, %v1244_v47, %v3424_v9  ;;  %vm1266_vm11 = vcmp.lt.s32.totalorder %v3204_v28, 0 }
 0x28d   :  { %v1431_v38 = vshll.u32 %v3434_v58, 30  ;;  %2181 = vcosq.f32 %v3394_v10  ;;  %v3507_v9 = vsel %vm3475_vm3, %v3196_v2, %v1245_v53  ;;  %vm3536_vm9 = vcmp.le.f32.partialorder %v1264_v26, 0.7853982 }
 0x28e   :  { %v1487_v34 = vsub.s32 32, %v1486_v62  ;;  %v1489_v6 = vshll.u32 %v3913_v0, %v1486_v62  ;;  %v1492_v19 = vshll.u32 %v3912_v54, %v1486_v62  ;;  %v1495_v18 = vshll.u32 %v3915_v41, %v1486_v62 }
 0x28f   :  { %v3446_v15 = vsub.s32 %v1428_v39, %v1431_v38  ;;  %v1498_v48 = vshll.u32 %v3917_v11, %v1486_v62  ;;  %v1501_v46 = vshll.u32 %v3910_v60, %v1486_v62  ;;  %vm1507_vm13 = vcmp.lt.s32.totalorder %v1485_v49, 4 }
 0x290   :  { %v1490_v16 = vshrl.u32 %v3912_v54, %v1487_v34  ;;  %v1493_v51 = vshrl.u32 %v3915_v41, %v1487_v34  ;;  %v1496_v30 = vshrl.u32 %v3917_v11, %v1487_v34  ;;  %v1499_v7 = vshrl.u32 %v3910_v60, %v1487_v34 }
 0x291   :  { %v1502_v22 = vshrl.u32 %v3911_v27, %v1487_v34  ;;  %v1434_v61 = vsub.s32 0, %v3446_v15  ;;  %v1580_v39 = vshrl.u32 %v1579_v37, 23  ;;  %v1488_v25 = vshrl.u32 %v3913_v0, %v1487_v34 }
 0x292   :  { %v1491_v13 = vor.u32 %v1490_v16, %v1489_v6  ;;  %v1494_v36 = vor.u32 %v1493_v51, %v1492_v19  ;;  %v1497_v20 = vor.u32 %v1496_v30, %v1495_v18  ;;  %v1500_v21 = vor.u32 %v1499_v7, %v1498_v48  ;;  %v3461_v16 = vpop.permute.xlu1 %951 }
 0x293   :  { %v1503_v52 = vor.u32 %v1502_v22, %v1501_v46  ;;  %v2023_v17 = vmin.u32 %v1434_v61, %v3446_v15  ;;  %vm1504_vm15 = vcmp.lt.s32.totalorder %v1485_v49, 1  ;;  %vm1505_vm0 = vcmp.lt.s32.totalorder %v1485_v49, 2 }
 0x294   :  { %v1509_v1 = vsel %vm1507_vm13, %v1497_v20, 2102212464  ;;  %vm1506_vm2 = vcmp.lt.s32.totalorder %v1485_v49, 3  ;;  %v1512_v8 = vsel %vm1504_vm15, %v1491_v13, %v1494_v36  ;;  %v1513_v56 = vsel %vm1507_vm13, %v1500_v21, 920167782 }
 0x295   :  { %v1436_v62 = vclz %v2023_v17  ;;  %v1508_v43 = vsel %vm1504_vm15, %v1488_v25, %v1491_v13  ;;  %v1514_v55 = vsel %vm1506_vm2, %v1497_v20, %v1513_v56  ;;  %v1516_v38 = vsel %vm1504_vm15, %v1494_v36, %v1497_v20 }
 0x296   :  { %v1510_v12 = vsel %vm1506_vm2, %v1494_v36, %v1509_v1  ;;  %v1515_v6 = vsel %vm1505_vm0, %v1512_v8, %v1514_v55  ;;  %v1517_v37 = vsel %vm1507_vm13, %v1503_v52, 1326507024  ;;  %v2030_v19 = vadd.s32 4294967169, %v1580_v39 }
 0x297   :  { %v2024_v34 = vadd.s32 4294967294, %v1436_v62  ;;  %v1518_v51 = vsel %vm1506_vm2, %v1500_v21, %v1517_v37  ;;  %v3464_v18 = vmul.u32.u64.low %v3436_v3, %v1515_v6  ;;  %v3465_v30 = vmul.u32.u64.high %v3436_v3, %v1515_v6, %v3464_v18  ;;  %v3532_v14 = vpop.eup %2181 }
 0x298   :  { %v1344_v48 = vand.u32 2147483647, %v1343_v35  ;;  %v1519_v7 = vsel %vm1505_vm0, %v1516_v38, %v1518_v51  ;;  %v1586_v22 = vadd.s32 1, %v2030_v19  ;;  %v3471_v13 = vadd.f32 %v3220_v40, %v3461_v16 }
 0x299   :  { %vm2025_vm4 = vcmp.lt.s32.totalorder %v2024_v34, 0  ;;  %v3480_v20 = vmul.u32.u64.low %v3436_v3, %v1519_v7  ;;  %v3481_v46 = vmul.u32.u64.high %v3436_v3, %v1519_v7, %v3480_v20  ;;  %v1346_v61 = vcvt.s32.f32 %v1339_v32 }
 0x29a   :  { %v3483_v21 = vsel %vm2025_vm4, 0, %v2024_v34  ;;  %v1511_v35 = vsel %vm1505_vm0, %v1508_v43, %v1510_v12  ;;  %vm1587_vm8 = vcmp.gt.s32.totalorder %v1586_v22, 0  ;;  %v1530_v52 = vadd.s32 1, %v3465_v30 }
 0x29b   :  { %v1444_v40 = vsub.s32 4294967266, %v3483_v21  ;;  %v3495_v39 = vand.u32 8388607, %v3898_v5  ;;  %v1347_v32 = vmul.f32 %v1346_v61, %v1344_v48  ;;  %v1588_v49 = vsel %vm1587_vm8, %v1586_v22, 0 }
 0x29c   :  { %v1683_v17 = vand.u32 2139095040, %v3471_v13  ;;  %v1527_v1 = vmul.u32 %v3436_v3, %v1511_v35  ;;  %vm1529_vm12 = vc.u32 %v3481_v46, %v3464_v18  ;;  %2183 = vsinq.f32 %v3394_v10 }
 0x29d   :  { %v1445_v25 = vadd.s32 127, %v1444_v40  ;;  %v1531_v47 = vsel %vm1529_vm12, %v1530_v52, %v3465_v30  ;;  %v1590_v8 = vand.u32 31, %v1588_v49  ;;  %v1424_v56 = vadd.s32 %v3407_v63, %v3414_v23 }
 0x29e   :  { %v1532_v62 = vadd.s32 %v1531_v47, %v1527_v1  ;;  %v1584_v43 = vor.u32 8388608, %v3495_v39  ;;  %v3897_v3 = vand.u32 2147483647, %v3471_v13  ;;  %v1348_v55 = vxor.u32 2147483648, %v1347_v32 }
 0x29f   :  { %v1440_v38 = vsub.s32 32, %v3483_v21  ;;  %v1591_v10 = vsub.s32 32, %v1590_v8  ;;  %v1684_v12 = vshrl.u32 %v1683_v17, 23  ;;  %v1446_v6 = vshll.u32 %v1445_v25, 23 }
 0x2a0   :  { %v1533_v37 = vadd.s32 536870912, %v1532_v62  ;;  %v1589_v19 = vshrl.u32 %v1588_v49, 5  ;;  %v1593_v34 = vshll.u32 %v3913_v0, %v1590_v8  ;;  %v1596_v30 = vshll.u32 %v3912_v54, %v1590_v8 }
 0x2a1   :  { %v1594_v51 = vshrl.u32 %v3912_v54, %v1591_v10  ;;  %v1597_v63 = vshrl.u32 %v3915_v41, %v1591_v10  ;;  %v1600_v23 = vshrl.u32 %v3917_v11, %v1591_v10  ;;  %v1599_v7 = vshll.u32 %v3915_v41, %v1590_v8 }
 0x2a2   :  { %v3520_v48 = vshrl.u32 %v1533_v37, 30  ;;  %v1602_v22 = vshll.u32 %v3917_v11, %v1590_v8  ;;  %v1603_v20 = vshrl.u32 %v3910_v60, %v1591_v10  ;;  %v1349_v61 = vsel %vm1266_vm11, %v1348_v55, %v1347_v32 }
 0x2a3   :  { %v1595_v35 = vor.u32 %v1594_v51, %v1593_v34  ;;  %v1598_v53 = vor.u32 %v1597_v63, %v1596_v30  ;;  %v1606_v40 = vshrl.u32 %v3911_v27, %v1591_v10  ;;  %v1601_v39 = vor.u32 %v1600_v23, %v1599_v7 }
 0x2a4   :  { %v1535_v52 = vshll.u32 %v3520_v48, 30  ;;  %v1604_v49 = vor.u32 %v1603_v20, %v1602_v22  ;;  %v1605_v17 = vshll.u32 %v3910_v60, %v1590_v8  ;;  %v1441_v25 = vshll.u32 %v3446_v15, %v3483_v21 }
 0x2a5   :  { %v1442_v1 = vshrl.u32 %v1424_v56, %v1440_v38  ;;  %v1447_v47 = vor.u32 4788187, %v1446_v6  ;;  %v2034_v37 = vadd.s32 4294967169, %v1684_v12  ;;  %vm1608_vm5 = vcmp.lt.s32.totalorder %v1589_v19, 1 }
 0x2a6   :  { %v3540_v55 = vsub.s32 %v1532_v62, %v1535_v52  ;;  %v1607_v34 = vor.u32 %v1606_v40, %v1605_v17  ;;  %vm1611_vm10 = vcmp.lt.s32.totalorder %v1589_v19, 4  ;;  %v3542_v8 = vpop.eup %2183  ;;  %v1592_v15 = vshrl.u32 %v3913_v0, %v1591_v10 }
 0x2a7   :  { %vm1610_vm13 = vcmp.lt.s32.totalorder %v1589_v19, 3  ;;  %v1616_v21 = vsel %vm1608_vm5, %v1595_v35, %v1598_v53  ;;  %v1617_v56 = vsel %vm1611_vm10, %v1604_v49, 920167782  ;;  %vm1609_vm15 = vcmp.lt.s32.totalorder %v1589_v19, 2 }
 0x2a8   :  { %v1538_v38 = vsub.s32 0, %v3540_v55  ;;  %v1613_v26 = vsel %vm1611_vm10, %v1601_v39, 2102212464  ;;  %v1618_v62 = vsel %vm1610_vm13, %v1601_v39, %v1617_v56  ;;  %v1443_v12 = vor.u32 %v1442_v1, %v1441_v25 }
 0x2a9   :  { %v1619_v6 = vsel %vm1609_vm15, %v1616_v21, %v1618_v62  ;;  %v1620_v51 = vsel %vm1608_vm5, %v1598_v53, %v1601_v39  ;;  %v1624_v30 = vshll.u32 %v1584_v43, 8  ;;  %v1448_v63 = vand.u32 2147483647, %v1447_v47 }
 0x2aa   :  { %v2027_v10 = vmin.u32 %v1538_v38, %v3540_v55  ;;  %v1612_v23 = vsel %vm1608_vm5, %v1592_v15, %v1595_v35  ;;  %v1621_v7 = vsel %vm1611_vm10, %v1607_v34, 1326507024  ;;  %v1614_v22 = vsel %vm1610_vm13, %v1598_v53, %v1613_v26 }
 0x2ab   :  { %v1622_v20 = vsel %vm1610_vm13, %v1604_v49, %v1621_v7  ;;  %v3557_v40 = vmul.u32.u64.low %v1624_v30, %v1619_v6  ;;  %v3558_v52 = vmul.u32.u64.high %v1624_v30, %v1619_v6, %v3557_v40  ;;  %v1690_v39 = vadd.s32 1, %v2034_v37 }
 0x2ac   :  { %v1540_v17 = vclz %v2027_v10  ;;  %v1623_v25 = vsel %vm1609_vm15, %v1620_v51, %v1622_v20  ;;  %v3564_v43 = vadd.f32 %v3224_v57, %v3461_v16  ;;  %v1450_v1 = vcvt.s32.f32 %v1443_v12 }
 0x2ad   :  { %v3566_v35 = vmul.u32.u64.low %v1624_v30, %v1623_v25  ;;  %v3567_v47 = vmul.u32.u64.high %v1624_v30, %v1623_v25, %v3566_v35  ;;  %v1687_v53 = vand.u32 8388607, %v3897_v3  ;;  %v1615_v34 = vsel %vm1609_vm15, %v1612_v23, %v1614_v22 }
 0x2ae   :  { %v2028_v49 = vadd.s32 4294967294, %v1540_v17  ;;  %vm1691_vm0 = vcmp.gt.s32.totalorder %v1690_v39, 0  ;;  %v3575_v15 = vsel %vm3536_vm9, %v3204_v28, %v1349_v61  ;;  %v1451_v37 = vmul.f32 %v1450_v1, %v1448_v63 }
 0x2af   :  { %v1634_v57 = vadd.s32 1, %v3558_v52  ;;  %v1692_v16 = vsel %vm1691_vm0, %v1690_v39, 0  ;;  %v3896_v21 = vmov 0.0|0.0   ;;  %2185 = vcosq.f32 %v3507_v9 }
 0x2b0   :  { %2067 = vmatprep.subr.bf16.mxu1 %v3896_v21  ;;  %vm2029_vm2 = vcmp.lt.s32.totalorder %v2028_v49, 0  ;;  %v1694_v56 = vand.u32 31, %v1692_v16  ;;  %v1787_v19 = vand.u32 2139095040, %v3564_v43  ;;  %2187 = vsinq.f32 %v3507_v9 }
 0x2b1   :  { %v3582_v38 = vsel %vm2029_vm2, 0, %v2028_v49  ;;  %v1631_v26 = vmul.u32 %v1624_v30, %v1615_v34  ;;  %vm1633_vm4 = vc.u32 %v3567_v47, %v3557_v40  ;;  %2189 = vcosq.f32 %v3575_v15 }
 0x2b2   :  { %vm1370_vm8 = vcmp.lt.s32.totalorder %v3218_v24, 0  ;;  %v1635_v61 = vsel %vm1633_vm4, %v1634_v57, %v3558_v52  ;;  %v1688_v62 = vor.u32 8388608, %v1687_v53  ;;  %v1452_v12 = vxor.u32 2147483648, %v1451_v37 }
 0x2b3   :  { %v1636_v6 = vadd.s32 %v1635_v61, %v1631_v26  ;;  %v1695_v51 = vsub.s32 32, %v1694_v56  ;;  %v1544_v9 = vsub.s32 32, %v3582_v38  ;;  %v1548_v10 = vsub.s32 4294967266, %v3582_v38 }
 0x2b4   :  { %v1697_v30 = vshll.u32 %v3913_v0, %v1694_v56  ;;  %v1788_v23 = vshrl.u32 %v1787_v19, 23  ;;  %v1700_v20 = vshll.u32 %v3912_v54, %v1694_v56  ;;  %v1703_v17 = vshll.u32 %v3915_v41, %v1694_v56 }
 0x2b5   :  { %v1637_v7 = vadd.s32 536870912, %v1636_v6  ;;  %v1698_v22 = vshrl.u32 %v3912_v54, %v1695_v51  ;;  %v1701_v52 = vshrl.u32 %v3915_v41, %v1695_v51  ;;  %v1704_v25 = vshrl.u32 %v3917_v11, %v1695_v51 }
 0x2b6   :  { %v1706_v39 = vshll.u32 %v3917_v11, %v1694_v56  ;;  %v1707_v1 = vshrl.u32 %v3910_v60, %v1695_v51  ;;  %vm3602_vm12 = vcmp.le.f32.partialorder %v1368_v44, 0.7853982  ;;  %v1528_v53 = vadd.s32 %v3464_v18, %v3481_v46 }
 0x2b7   :  { %v3608_v49 = vshrl.u32 %v1637_v7, 30  ;;  %v1693_v34 = vshrl.u32 %v1692_v16, 5  ;;  %v3610_v57 = vshll.u32 %v1688_v62, 8  ;;  %v1699_v19 = vor.u32 %v1698_v22, %v1697_v30 }
 0x2b8   :  { %v1702_v26 = vor.u32 %v1701_v52, %v1700_v20  ;;  %v1705_v61 = vor.u32 %v1704_v25, %v1703_v17  ;;  %v1708_v21 = vor.u32 %v1707_v1, %v1706_v39  ;;  %v1453_v3 = vsel %vm1370_vm8, %v1452_v12, %v1451_v37 }
 0x2b9   :  { %v1639_v44 = vshll.u32 %v3608_v49, 30  ;;  %v1709_v5 = vshll.u32 %v3910_v60, %v1694_v56  ;;  %v1710_v50 = vshrl.u32 %v3911_v27, %v1695_v51  ;;  %v3617_v63 = vpop.eup %2185  ;;  %v1546_v18 = vshrl.u32 %v1528_v53, %v1544_v9 }
 0x2ba   :  { %v1549_v46 = vadd.s32 127, %v1548_v10  ;;  %v1696_v16 = vshrl.u32 %v3913_v0, %v1695_v51  ;;  %v2038_v62 = vadd.s32 4294967169, %v1788_v23  ;;  %v3620_v30 = vpop.eup %2187  ;;  %vm1712_vm5 = vcmp.lt.s32.totalorder %v1693_v34, 1 }
 0x2bb   :  { %v3622_v7 = vsub.s32 %v1636_v6, %v1639_v44  ;;  %v1711_v22 = vor.u32 %v1710_v50, %v1709_v5  ;;  %vm1715_vm10 = vcmp.lt.s32.totalorder %v1693_v34, 4  ;;  %v3624_v37 = vpop.eup %2189  ;;  %vm1714_vm13 = vcmp.lt.s32.totalorder %v1693_v34, 3 }
 0x2bc   :  { %v1717_v56 = vsel %vm1715_vm10, %v1705_v61, 2102212464  ;;  %v1720_v12 = vsel %vm1712_vm5, %v1699_v19, %v1702_v26  ;;  %v1721_v20 = vsel %vm1715_vm10, %v1708_v21, 920167782  ;;  %vm1713_vm15 = vcmp.lt.s32.totalorder %v1693_v34, 2 }
 0x2bd   :  { %v1642_v52 = vsub.s32 0, %v3622_v7  ;;  %v1722_v9 = vsel %vm1714_vm13, %v1705_v61, %v1721_v20  ;;  %v1724_v10 = vsel %vm1712_vm5, %v1702_v26, %v1705_v61  ;;  %v1716_v51 = vsel %vm1712_vm5, %v1696_v16, %v1699_v19 }
 0x2be   :  { %v1718_v23 = vsel %vm1714_vm13, %v1702_v26, %v1717_v56  ;;  %v1723_v17 = vsel %vm1713_vm15, %v1720_v12, %v1722_v9  ;;  %v1725_v6 = vsel %vm1715_vm10, %v1711_v22, 1326507024  ;;  %v3637_v1 = vsel %vm3602_vm12, %v3218_v24, %v1453_v3 }
 0x2bf   :  { %v2031_v50 = vmin.u32 %v1642_v52, %v3622_v7  ;;  %v1726_v5 = vsel %vm1714_vm13, %v1708_v21, %v1725_v6  ;;  %v3630_v25 = vmul.u32.u64.low %v3610_v57, %v1723_v17  ;;  %v3631_v39 = vmul.u32.u64.high %v3610_v57, %v1723_v17, %v3630_v25 }
 0x2c0   :  { %v1550_v53 = vshll.u32 %v1549_v46, 23  ;;  %v1727_v19 = vsel %vm1713_vm15, %v1724_v10, %v1726_v5  ;;  %v1794_v26 = vadd.s32 1, %v2038_v62  ;;  %v1545_v61 = vshll.u32 %v3540_v55, %v3582_v38 }
 0x2c1   :  { %v1644_v44 = vclz %v2031_v50  ;;  %v3643_v21 = vmul.u32.u64.low %v3610_v57, %v1727_v19  ;;  %v3644_v16 = vmul.u32.u64.high %v3610_v57, %v1727_v19, %v3643_v21  ;;  %v1719_v22 = vsel %vm1713_vm15, %v1716_v51, %v1718_v23 }
 0x2c2   :  { %v3963_v56 = vand.u32 2147483647, %v3564_v43  ;;  %vm1795_vm0 = vcmp.gt.s32.totalorder %v1794_v26, 0  ;;  %v1142_v3 = vsub.s32 4, %v3298_v4  ;;  %v3650_v46 = vor.u32 %v1546_v18, %v1545_v61 }
 0x2c3   :  { %v2032_v20 = vadd.s32 4294967294, %v1644_v44  ;;  %v1738_v62 = vadd.s32 1, %v3631_v39  ;;  %v1796_v52 = vsel %vm1795_vm0, %v1794_v26, 0  ;;  %2191 = vsinq.f32 %v3575_v15 }
 0x2c4   :  { %v1791_v12 = vand.u32 8388607, %v3963_v56  ;;  %v3654_v55 = vor.u32 4788187, %v1550_v53  ;;  %v1798_v38 = vand.u32 31, %v1796_v52  ;;  %2193 = vcosq.f32 %v3637_v1 }
 0x2c5   :  { %vm2033_vm2 = vcmp.lt.s32.totalorder %v2032_v20, 0  ;;  %v1735_v34 = vmul.u32 %v3610_v57, %v1719_v22  ;;  %vm1737_vm4 = vc.u32 %v3644_v16, %v3630_v25  ;;  %v1143_v51 = vsel %vm1058_vm14, %v1142_v3, %v3298_v4 }
 0x2c6   :  { %v1739_v18 = vsel %vm1737_vm4, %v1738_v62, %v3631_v39  ;;  %v1792_v9 = vor.u32 8388608, %v1791_v12  ;;  %v1799_v10 = vsub.s32 32, %v1798_v38  ;;  %v1554_v15 = vcvt.s32.f32 %v3650_v46 }
 0x2c7   :  { %v1632_v23 = vadd.s32 %v3557_v40, %v3567_v47  ;;  %v1647_v17 = vsel %vm2033_vm2, 0, %v2032_v20  ;;  %v1740_v6 = vadd.s32 %v1739_v18, %v1735_v34  ;;  %v1552_v57 = vand.u32 2147483647, %v3654_v55 }
 0x2c8   :  { %v1797_v50 = vshrl.u32 %v1796_v52, 5  ;;  %v1802_v5 = vshrl.u32 %v3912_v54, %v1799_v10  ;;  %v1805_v39 = vshrl.u32 %v3915_v41, %v1799_v10  ;;  %v1801_v19 = vshll.u32 %v3913_v0, %v1798_v38 }
 0x2c9   :  { %v1741_v53 = vadd.s32 536870912, %v1740_v6  ;;  %v1804_v26 = vshll.u32 %v3912_v54, %v1798_v38  ;;  %v1145_v4 = vsel %vm3362_vm1, 0, %v1143_v51  ;;  %v1648_v61 = vsub.s32 32, %v1647_v17 }
 0x2ca   :  { %v1652_v44 = vsub.s32 4294967266, %v1647_v17  ;;  %v1807_v40 = vshll.u32 %v3915_v41, %v1798_v38  ;;  %v1808_v47 = vshrl.u32 %v3917_v11, %v1799_v10  ;;  %v1803_v22 = vor.u32 %v1802_v5, %v1801_v19 }
 0x2cb   :  { %v3676_v21 = vshrl.u32 %v1741_v53, 30  ;;  %v1806_v56 = vor.u32 %v1805_v39, %v1804_v26  ;;  %v1811_v12 = vshrl.u32 %v3910_v60, %v1799_v10  ;;  %v1810_v46 = vshll.u32 %v3917_v11, %v1798_v38 }
 0x2cc   :  { %v1809_v3 = vor.u32 %v1808_v47, %v1807_v40  ;;  %v1813_v54 = vshll.u32 %v3910_v60, %v1798_v38  ;;  %v1814_v45 = vshrl.u32 %v3911_v27, %v1799_v10  ;;  %v1832_v62 = vshll.u32 %v1792_v9, 8 }
 0x2cd   :  { %v1743_v20 = vshll.u32 %v3676_v21, 30  ;;  %v1149_v52 = vadd.s32 3, %v1145_v4  ;;  %v1153_v41 = vxor.u32 2147483648, %v3542_v8  ;;  %v3684_v55 = vpop.eup %2191  ;;  %v1650_v34 = vshrl.u32 %v1632_v23, %v1648_v61 }
 0x2ce   :  { %v1800_v18 = vshrl.u32 %v3913_v0, %v1799_v10  ;;  %v1812_v51 = vor.u32 %v1811_v12, %v1810_v46  ;;  %v1815_v5 = vor.u32 %v1814_v45, %v1813_v54  ;;  %v3687_v39 = vpop.eup %2193  ;;  %v1653_v11 = vadd.s32 127, %v1652_v44 }
 0x2cf   :  { %v3689_v53 = vsub.s32 %v1740_v6, %v1743_v20  ;;  %vm1816_vm14 = vcmp.lt.s32.totalorder %v1797_v50, 1  ;;  %vm1819_vm1 = vcmp.lt.s32.totalorder %v1797_v50, 4  ;;  %vm1818_vm5 = vcmp.lt.s32.totalorder %v1797_v50, 3 }
 0x2d0   :  { %v1821_v27 = vsel %vm1819_vm1, %v1809_v3, 2102212464  ;;  %v1824_v60 = vsel %vm1816_vm14, %v1803_v22, %v1806_v56  ;;  %v1825_v38 = vsel %vm1819_vm1, %v1812_v51, 920167782  ;;  %vm1817_vm10 = vcmp.lt.s32.totalorder %v1797_v50, 2 }
 0x2d1   :  { %v1746_v9 = vsub.s32 0, %v3689_v53  ;;  %v1820_v19 = vsel %vm1816_vm14, %v1800_v18, %v1803_v22  ;;  %v1826_v23 = vsel %vm1818_vm5, %v1809_v3, %v1825_v38  ;;  %v1822_v26 = vsel %vm1818_vm5, %v1806_v56, %v1821_v27 }
 0x2d2   :  { %v1827_v0 = vsel %vm1817_vm10, %v1824_v60, %v1826_v23  ;;  %v1828_v10 = vsel %vm1816_vm14, %v1806_v56, %v1809_v3  ;;  %v1829_v4 = vsel %vm1819_vm1, %v1815_v5, 1326507024  ;;  %v1649_v61 = vshll.u32 %v3622_v7, %v1647_v17 }
 0x2d3   :  { %v1654_v6 = vshll.u32 %v1653_v11, 23  ;;  %v2035_v44 = vmin.u32 %v1746_v9, %v3689_v53  ;;  %v1830_v40 = vsel %vm1818_vm5, %v1812_v51, %v1829_v4  ;;  %vm1148_vm13 = vweird.f32 %v3194_v42 }
 0x2d4   :  { %v1831_v47 = vsel %vm1817_vm10, %v1828_v10, %v1830_v40  ;;  %v3697_v12 = vmul.u32.u64.low %v1832_v62, %v1827_v0  ;;  %v3698_v46 = vmul.u32.u64.high %v1832_v62, %v1827_v0, %v3697_v12  ;;  %v1150_v22 = vand.u32 3, %v1149_v52 }
 0x2d5   :  { %v1748_v54 = vclz %v2035_v44  ;;  %v1823_v45 = vsel %vm1817_vm10, %v1820_v19, %v1822_v26  ;;  %v3702_v56 = vmul.u32.u64.low %v1832_v62, %v1831_v47  ;;  %v3703_v3 = vmul.u32.u64.high %v1832_v62, %v1831_v47, %v3702_v56 }
 0x2d6   :  { %2195 = vsinq.f32 %v3637_v1  ;;  %v1555_v7 = vmul.f32 %v1554_v15, %v1552_v57  ;;  %v1651_v17 = vor.u32 %v1650_v34, %v1649_v61  ;;  %vm1152_vm15 = vcmp.eq.s32.totalorder %v1150_v22, 0 }
 0x2d7   :  { %v1655_v20 = vor.u32 4788187, %v1654_v6  ;;  %v2036_v18 = vadd.s32 4294967294, %v1748_v54  ;;  %v1154_v51 = vsel %vm1152_vm15, %v3532_v14, %v1153_v41  ;;  %v1156_v5 = vxor.u32 2147483648, %v3532_v14 }
 0x2d8   :  { %v1839_v11 = vmul.u32 %v1832_v62, %v1823_v45  ;;  %v1842_v52 = vadd.s32 1, %v3698_v46  ;;  %vm1155_vm0 = vcmp.eq.s32.totalorder %v1150_v22, 2  ;;  %v1246_v50 = vsub.s32 4, %v3329_v33 }
 0x2d9   :  { %vm2037_vm2 = vcmp.lt.s32.totalorder %v2036_v18, 0  ;;  %vm1841_vm4 = vc.u32 %v3703_v3, %v3697_v12  ;;  %vm1151_vm14 = vcmp.lt.s32.totalorder %v1150_v22, 2  ;;  %v1157_v1 = vsel %vm1155_vm0, %v1156_v5, %v3542_v8 }
 0x2da   :  { %v1751_v15 = vsel %vm2037_vm2, 0, %v2036_v18  ;;  %v1843_v57 = vsel %vm1841_vm4, %v1842_v52, %v3698_v46  ;;  %v1158_v34 = vsel %vm1151_vm14, %v1154_v51, %v1157_v1  ;;  %v1247_v14 = vsel %vm1162_vm6, %v1246_v50, %v3329_v33 }
 0x2db   :  { %v1736_v62 = vadd.s32 %v3630_v25, %v3644_v16  ;;  %v1752_v41 = vsub.s32 32, %v1751_v15  ;;  %v1756_v27 = vsub.s32 4294967266, %v1751_v15  ;;  %v1844_v60 = vadd.s32 %v1843_v57, %v1839_v11 }
 0x2dc   :  { %v1656_v38 = vand.u32 2147483647, %v1655_v20  ;;  %v3721_v9 = vsel %vm1148_vm13, nan, %v1158_v34  ;;  %v1249_v8 = vsel %vm3475_vm3, 0, %v1247_v14  ;;  %v1350_v19 = vsub.s32 4, %v3372_v29 }
 0x2dd   :  { %v1754_v23 = vshrl.u32 %v1736_v62, %v1752_v41  ;;  %v1757_v26 = vadd.s32 127, %v1756_v27  ;;  %v1845_v0 = vadd.s32 536870912, %v1844_v60  ;;  %v1253_v33 = vadd.s32 3, %v1249_v8 }
 0x2de   :  { %v1556_v10 = vxor.u32 2147483648, %v1555_v7  ;;  %v1658_v4 = vcvt.s32.f32 %v1651_v17  ;;  %v1753_v25 = vshll.u32 %v3689_v53, %v1751_v15  ;;  %v1351_v16 = vsel %vm1266_vm11, %v1350_v19, %v3372_v29 }
 0x2df   :  { %vm1474_vm6 = vcmp.lt.s32.totalorder %v3368_v31, 0  ;;  %v1758_v42 = vshll.u32 %v1757_v26, 23  ;;  %v3731_v61 = vshrl.u32 %v1845_v0, 30  ;;  %v1353_v40 = vsel %vm3536_vm9, 0, %v1351_v16 }
 0x2e0   :  { %v2196_v36 = vpop.eup %2195  ;;  %v1659_v6 = vmul.f32 %v1658_v4, %v1656_v38  ;;  %v1755_v44 = vor.u32 %v1754_v23, %v1753_v25  ;;  %v1454_v47 = vsub.s32 4, %v3434_v58  ;;  %v3964_v46 = vand.u32 2147483647, %v3368_v31 }
 0x2e1   :  { %v1759_v29 = vor.u32 4788187, %v1758_v42  ;;  %v1847_v22 = vshll.u32 %v3731_v61, 30  ;;  %v1254_v54 = vand.u32 3, %v1253_v33  ;;  %v1557_v45 = vsel %vm1474_vm6, %v1556_v10, %v1555_v7 }
 0x2e2   :  { %vm3738_vm3 = vcmp.le.f32.partialorder %v3964_v46, 0.7853982  ;;  %vm1578_vm11 = vcmp.lt.s32.totalorder %v3428_v59, 0  ;;  %v1257_v32 = vxor.u32 2147483648, %v3620_v30  ;;  %v1260_v56 = vxor.u32 2147483648, %v3617_v63 }
 0x2e3   :  { %v1357_v17 = vadd.s32 3, %v1353_v40  ;;  %v1760_v20 = vand.u32 2147483647, %v1759_v29  ;;  %v3748_v18 = vsub.s32 %v1844_v60, %v1847_v22  ;;  %vm1252_vm9 = vweird.f32 %v3196_v2 }
 0x2e4   :  { %v1361_v51 = vxor.u32 2147483648, %v3684_v55  ;;  %v1364_v5 = vxor.u32 2147483648, %v3624_v37  ;;  %v1660_v11 = vxor.u32 2147483648, %v1659_v6  ;;  %v1762_v52 = vcvt.s32.f32 %v1755_v44 }
 0x2e5   :  { %v1358_v50 = vand.u32 3, %v1357_v17  ;;  %v1455_v7 = vsel %vm1370_vm8, %v1454_v47, %v3434_v58  ;;  %v1850_v1 = vsub.s32 0, %v3748_v18  ;;  %vm1256_vm1 = vcmp.eq.s32.totalorder %v1254_v54, 0 }
 0x2e6   :  { %vm1259_vm5 = vcmp.eq.s32.totalorder %v1254_v54, 2  ;;  %v1457_v15 = vsel %vm3602_vm12, 0, %v1455_v7  ;;  %v1258_v57 = vsel %vm1256_vm1, %v3617_v63, %v1257_v32  ;;  %v1763_v14 = vmul.f32 %v1762_v52, %v1760_v20 }
 0x2e7   :  { %v1261_v34 = vsel %vm1259_vm5, %v1260_v56, %v3620_v30  ;;  %vm1360_vm10 = vcmp.eq.s32.totalorder %v1358_v50, 0  ;;  %vm1363_vm13 = vcmp.eq.s32.totalorder %v1358_v50, 2  ;;  %v2039_v62 = vmin.u32 %v1850_v1, %v3748_v18 }
 0x2e8   :  { %v1362_v41 = vsel %vm1360_vm10, %v3624_v37, %v1361_v51  ;;  %v1365_v58 = vsel %vm1363_vm13, %v1364_v5, %v3684_v55  ;;  %vm1255_vm8 = vcmp.lt.s32.totalorder %v1254_v54, 2  ;;  %vm1359_vm15 = vcmp.lt.s32.totalorder %v1358_v50, 2 }
 0x2e9   :  { %v1461_v27 = vadd.s32 3, %v1457_v15  ;;  %v1465_v60 = vxor.u32 2147483648, %v2196_v36  ;;  %v1852_v38 = vclz %v2039_v62  ;;  %v1262_v35 = vsel %vm1255_vm8, %v1258_v57, %v1261_v34 }
 0x2ea   :  { %v1366_v8 = vsel %vm1359_vm15, %v1362_v41, %v1365_v58  ;;  %v1468_v63 = vxor.u32 2147483648, %v3687_v39  ;;  %v1560_v30 = vsel %vm3738_vm3, %v3368_v31, %v1557_v45  ;;  %v3967_v19 = vand.u32 2147483647, %v3428_v59 }
 0x2eb   :  { %vm1682_vm0 = vcmp.lt.s32.totalorder %v3471_v13, 0  ;;  %v1462_v37 = vand.u32 3, %v1461_v27  ;;  %v1661_v55 = vsel %vm1578_vm11, %v1660_v11, %v1659_v6  ;;  %v1764_v26 = vxor.u32 2147483648, %v1763_v14 }
 0x2ec   :  { %vm3770_vm12 = vcmp.le.f32.partialorder %v3967_v19, 0.7853982  ;;  %v2040_v0 = vadd.s32 4294967294, %v1852_v38  ;;  %vm1356_vm2 = vweird.f32 %v3204_v28  ;;  %v1263_v33 = vsel %vm1252_vm9, nan, %v1262_v35 }
 0x2ed   :  { %v1367_v10 = vsel %vm1356_vm2, nan, %v1366_v8  ;;  %vm1464_vm4 = vcmp.eq.s32.totalorder %v1462_v37, 0  ;;  %vm1467_vm14 = vcmp.eq.s32.totalorder %v1462_v37, 2  ;;  %vm1463_vm5 = vcmp.lt.s32.totalorder %v1462_v37, 2 }
 0x2ee   :  { %vm2041_vm1 = vcmp.lt.s32.totalorder %v2040_v0, 0  ;;  %v1466_v4 = vsel %vm1464_vm4, %v3687_v39, %v1465_v60  ;;  %v1469_v25 = vsel %vm1467_vm14, %v1468_v63, %v2196_v36  ;;  %v1840_v16 = vadd.s32 %v3697_v12, %v3703_v3 }
 0x2ef   :  { %v1855_v42 = vsel %vm2041_vm1, 0, %v2040_v0  ;;  %vm1460_vm10 = vweird.f32 %v3218_v24  ;;  %v1470_v6 = vsel %vm1463_vm5, %v1466_v4, %v1469_v25  ;;  %v1765_v28 = vsel %vm1682_vm0, %v1764_v26, %v1763_v14 }
 0x2f0   :  { %v1856_v2 = vsub.s32 32, %v1855_v42  ;;  %v1860_v44 = vsub.s32 4294967266, %v1855_v42  ;;  %v1471_v40 = vsel %vm1460_vm10, nan, %v1470_v6  ;;  %v1664_v47 = vsel %vm3770_vm12, %v3428_v59, %v1661_v55 }
 0x2f1   :  { %v3970_v39 = vand.u32 2147483647, %v3471_v13  ;;  %v1888_v12 = vadd.f32 %v1263_v33, %v3721_v9  ;;  %v1889_v24 = vadd.f32 %v1471_v40, %v1367_v10  ;;  %2197 = vcosq.f32 %v1560_v30 }
 0x2f2   :  { %v1857_v3 = vshll.u32 %v3748_v18, %v1855_v42  ;;  %v1858_v46 = vshrl.u32 %v1840_v16, %v1856_v2  ;;  %v1861_v29 = vadd.s32 127, %v1860_v44  ;;  %v1558_v22 = vsub.s32 4, %v3520_v48 }
 0x2f3   :  { %vm3791_vm9 = vcmp.le.f32.partialorder %v3970_v39, 0.7853982  ;;  %2199 = vsinq.f32 %v1560_v30  ;;  %v2068_v45 = vpack.c.bf16 %v1889_v24, %v1888_v12  ;;  %v1662_v32 = vsub.s32 4, %v3608_v49 }
 0x2f4   :  { %v1768_v54 = vsel %vm3791_vm9, %v3471_v13, %v1765_v28  ;;  %2201 = vcosq.f32 %v1664_v47  ;;  %v1859_v56 = vor.u32 %v1858_v46, %v1857_v3  ;;  %v1862_v17 = vshll.u32 %v1861_v29, 23 }
 0x2f5   :  { %2203 = vsinq.f32 %v1664_v47  ;;  %v1766_v9 = vsub.s32 4, %v3676_v21  ;;  %2069 = vmatpush3.bf16.msra.mxu1 %v2068_v45  ;;  %v3973_v18 = vmov 0.0|0.0   ;;  %v1559_v51 = vsel %vm1474_vm6, %v1558_v22, %v3520_v48 }
 0x2f6   :  { %2205 = vcosq.f32 %v1768_v54  ;;  %v1863_v20 = vor.u32 4788187, %v1862_v17  ;;  %2070 = vmatprep.subr.bf16.mxu1 %v3973_v18  ;;  %v1663_v5 = vsel %vm1578_vm11, %v1662_v32, %v3608_v49  ;;  %v1866_v52 = vcvt.s32.f32 %v1859_v56 }
 0x2f7   :  { %2207 = vsinq.f32 %v1768_v54  ;;  %v1767_v50 = vsel %vm1682_vm0, %v1766_v9, %v3676_v21  ;;  %v1870_v1 = vsub.s32 4, %v3731_v61  ;;  %v1561_v15 = vsel %vm3738_vm3, 0, %v1559_v51 }
 0x2f8   :  { %v1864_v11 = vand.u32 2147483647, %v1863_v20  ;;  %v1665_v48 = vsel %vm3770_vm12, 0, %v1663_v5  ;;  %vm2222_vm6 = vmmov 0   ;;  %v3974_v57 = vmov 0.0  }
 0x2f9   :  { %2056 = vmatprep.mubr.msk.f32.mxu1 %vm2222_vm6, %v3974_v57  ;;  %v1769_v14 = vsel %vm3791_vm9, 0, %v1767_v50  ;;  %vm1786_vm11 = vcmp.lt.s32.totalorder %v3564_v43, 0  ;;  %v1565_v21 = vadd.s32 3, %v1561_v15  ;;  %v3975_v58 = vand.u32 2147483647, %v3564_v43 }
 0x2fa   :  { %v1867_v7 = vmul.f32 %v1866_v52, %v1864_v11  ;;  %v1871_v60 = vsel %vm1786_vm11, %v1870_v1, %v3731_v61  ;;  %v1669_v38 = vadd.s32 3, %v1665_v48  ;;  %v1773_v63 = vadd.s32 3, %v1769_v14 }
 0x2fb   :  { %v2198_v34 = vpop.eup %2197  ;;  %vm3824_vm13 = vcmp.le.f32.partialorder %v3975_v58, 0.7853982  ;;  %v1566_v23 = vand.u32 3, %v1565_v21  ;;  %vm1564_vm5 = vweird.f32 %v3368_v31  ;;  %vm1668_vm10 = vweird.f32 %v3428_v59  ;;  %v1892_v59 = vld [vmem:[%s3853_s6] sm:$0x1] }
 0x2fc   :  { %v1868_v49 = vxor.u32 2147483648, %v1867_v7  ;;  %v1873_v37 = vsel %vm3824_vm13, 0, %v1871_v60  ;;  %v1572_v26 = vxor.u32 2147483648, %v2198_v34  ;;  %v1670_v0 = vand.u32 3, %v1669_v38 }
 0x2fd   :  { %v2200_v62 = vpop.eup %2199  ;;  %v1774_v61 = vand.u32 3, %v1773_v63  ;;  %v1877_v16 = vadd.s32 3, %v1873_v37  ;;  %vm1568_vm3 = vcmp.eq.s32.totalorder %v1566_v23, 0  ;;  %vm1571_vm8 = vcmp.eq.s32.totalorder %v1566_v23, 2 }
 0x2fe   :  { %v2202_v41 = vpop.eup %2201  ;;  %v1869_v27 = vsel %vm1786_vm11, %v1868_v49, %v1867_v7  ;;  %v1569_v55 = vxor.u32 2147483648, %v2200_v62  ;;  %v1573_v6 = vsel %vm1571_vm8, %v1572_v26, %v2200_v62  ;;  %vm1672_vm15 = vcmp.eq.s32.totalorder %v1670_v0, 0 }
 0x2ff   :  { %v2204_v35 = vpop.eup %2203  ;;  %v1872_v8 = vsel %vm3824_vm13, %v3564_v43, %v1869_v27  ;;  %v1676_v10 = vxor.u32 2147483648, %v2202_v41  ;;  %vm1675_vm12 = vcmp.eq.s32.totalorder %v1670_v0, 2  ;;  %vm1776_vm0 = vcmp.eq.s32.totalorder %v1774_v61, 0 }
 0x300   :  { %v2206_v30 = vpop.eup %2205  ;;  %2209 = vcosq.f32 %v1872_v8  ;;  %v1673_v33 = vxor.u32 2147483648, %v2204_v35  ;;  %v1570_v42 = vsel %vm1568_vm3, %v2198_v34, %v1569_v55  ;;  %vm1779_vm2 = vcmp.eq.s32.totalorder %v1774_v61, 2 }
 0x301   :  { %v2208_v19 = vpop.eup %2207  ;;  %2211 = vsinq.f32 %v1872_v8  ;;  %v1780_v25 = vxor.u32 2147483648, %v2206_v30  ;;  %v1677_v2 = vsel %vm1675_vm12, %v1676_v10, %v2204_v35  ;;  %v1878_v47 = vand.u32 3, %v1877_v16 }
 0x302   :  { %v1777_v4 = vxor.u32 2147483648, %v2208_v19  ;;  %v1674_v28 = vsel %vm1672_vm15, %v2202_v41, %v1673_v33  ;;  %vm1567_vm4 = vcmp.lt.s32.totalorder %v1566_v23, 2  ;;  %vm1671_vm14 = vcmp.lt.s32.totalorder %v1670_v0, 2 }
 0x303   :  { %v1781_v40 = vsel %vm1779_vm2, %v1780_v25, %v2208_v19  ;;  %v1574_v36 = vsel %vm1567_vm4, %v1570_v42, %v1573_v6  ;;  %vm1775_vm1 = vcmp.lt.s32.totalorder %v1774_v61, 2  ;;  %v1678_v24 = vsel %vm1671_vm14, %v1674_v28, %v1677_v2 }
 0x304   :  { %v1778_v44 = vsel %vm1776_vm0, %v2206_v30, %v1777_v4  ;;  %vm1883_vm9 = vcmp.eq.s32.totalorder %v1878_v47, 2  ;;  %v1575_v22 = vsel %vm1564_vm5, nan, %v1574_v36  ;;  %vm1772_vm6 = vweird.f32 %v3471_v13 }
 0x305   :  { %v1782_v3 = vsel %vm1775_vm1, %v1778_v44, %v1781_v40  ;;  %vm1880_vm11 = vcmp.eq.s32.totalorder %v1878_v47, 0  ;;  %v1679_v45 = vsel %vm1668_vm10, nan, %v1678_v24  ;;  %vm1879_vm13 = vcmp.lt.s32.totalorder %v1878_v47, 2 }
 0x306   :  { %v1783_v32 = vsel %vm1772_vm6, nan, %v1782_v3  ;;  %vm1876_vm3 = vweird.f32 %v3564_v43  ;;  %v1890_v20 = vadd.f32 %v1679_v45, %v1575_v22  ;;  %v1894_v13 = vstv %s3854_s0 }
 0x30a   :  { %v2210_v39 = vpop.eup %2209 }
 0x30b   :  { %v2212_v12 = vpop.eup %2211  ;;  %v1884_v46 = vxor.u32 2147483648, %v2210_v39 }
 0x30c   :  { %v1881_v29 = vxor.u32 2147483648, %v2212_v12 }
 0x30d   :  { %v1885_v54 = vsel %vm1883_vm9, %v1884_v46, %v2212_v12 }
 0x30e   :  { %v1882_v56 = vsel %vm1880_vm11, %v2210_v39, %v1881_v29 }
 0x30f   :  { %v1886_v17 = vsel %vm1879_vm13, %v1882_v56, %v1885_v54 }
 0x310   :  { %v1887_v9 = vsel %vm1876_vm3, nan, %v1886_v17 }
 0x311   :  { %v1891_v18 = vadd.f32 %v1887_v9, %v1783_v32 }
 0x313   :  { %v2071_v31 = vpack.c.bf16 %v1891_v18, %v1890_v20 }
 0x315   :  { %2072 = vmatpush3.bf16.msra.mxu1 %v2071_v31 }
 0x318   :  { %2057 = vmatmul.mubr.msk.f32.vlgmr.msra.gmra.mrb[0].mxu1 %vm954_vm7, %v1892_v59 }
 0x3eb   :  { %v1964_v51 = vpop.f32.mrb[0].mxu1 }
 0x3ec   :  { %v1965_v5 = vadd.f32 %v1964_v51, %v1894_v13  ;;  %v2058_v11 = vpop.f32.mrb[1].mxu1 }
 0x3ee   :  { %1968 = vst [vmem:[%s3855_s7] sm:$0x1] %v1965_v5 }

</bundles_post_ra>
